<compile_context>
chip_gen: v6e
topology: v6e:2x2x1
jax: 0.10.0
libtpu: 0.0.40
codegen_flags: <defaults>
</compile_context>

<pallas_src>
import functools

import jax
import jax.numpy as jnp
from jax.experimental import pallas as pl
from jax.experimental.pallas import tpu as pltpu

BN_EPS = 1e-5
L2_EPS = 1e-12
LANE = 128   # pad all feature dims to the TPU lane width


def _round_up(n, m):
    return ((n + m - 1) // m) * m


# --------------------------- fused Pallas kernel -----------------------------

def _xvector_fused_kernel(*refs, splice_indexes, layer_dins, t0p, t_valid,
                          left_total):
    """Whole forward pass; activations never leave VMEM.

    refs:
      x                        (bb*t0p, 128) f32   flat [batch*time, feat_pad]
      per TDNN layer: w        (128, 128) bf16 (contexts packed into rows),
                      b        (1, 128) f32
      MLP:  w1 (128,128) bf16, b1 (1,128) f32, w2 (128,128) bf16, b2 (1,128) f32
      head: wa_mean (128,128) bf16, wa_std (128,128) bf16, ba (1,128) f32,
            wb (128, EP) bf16, bb (1, EP) f32
      out                      (bb, EP) f32
    """
    it = iter(refs)
    x_ref = next(it)
    tdnn = [(next(it), next(it)) for _ in splice_indexes]
    w1_ref, b1_ref, w2_ref, b2_ref = (next(it) for _ in range(4))
    wam_ref, was_ref, ba_ref, wb_ref, bb_ref = (next(it) for _ in range(5))
    out_ref = next(it)

    h = x_ref[...]                                   # (rows, 128) f32
    rows = h.shape[0]
    bsz = rows // t0p

    # ---- TDNN stack: pack contexts into lanes (K) -> ONE matmul per layer.
    # Same-length "convolution": edge rows are garbage, excluded at pooling.
    for (w_ref, b_ref), ctx, din in zip(tdnn, splice_indexes, layer_dins):
        packed = None
        for ci, c in enumerate(ctx):
            v = h
            if c != 0:
                # out[t] = h[t + c]  (wrap lands only in garbage edge rows)
                v = pltpu.roll(v, (-c) % rows, axis=0)
            if ci != 0:
                # place context ci's features at lanes [ci*din, (ci+1)*din)
                v = pltpu.roll(v, ci * din, axis=1)
            packed = v if packed is None else packed + v
        z = jnp.dot(packed.astype(jnp.bfloat16), w_ref[...],
                    preferred_element_type=jnp.float32)
        # Linear + relu; the following BN is folded into the next layer's W/b.
        h = jnp.maximum(z + b_ref[...], 0.0)

    # ---- pre_stat MLP (SequenceWise): Linear -> relu -> (BN folded) -> Linear.
    m = jnp.dot(h.astype(jnp.bfloat16), w1_ref[...],
                preferred_element_type=jnp.float32) + b1_ref[...]
    m = jnp.maximum(m, 0.0)
    z = jnp.dot(m.astype(jnp.bfloat16), w2_ref[...],
                preferred_element_type=jnp.float32) + b2_ref[...]

    # ---- StatsPooling: one-pass mean / unbiased std over the valid frames.
    z3 = z.reshape(bsz, t0p, z.shape[-1])            # t0p % 8 == 0 -> aligned
    zv = z3[:, left_total:left_total + t_valid, :]   # (bsz, t_valid, 128)
    s1 = jnp.sum(zv, axis=1)                         # (bsz, 128)
    s2 = jnp.sum(zv * zv, axis=1)
    mean = s1 * (1.0 / t_valid)
    var = (s2 - mean * s1) / (t_valid - 1)           # unbiased (torch.std default)
    std = jnp.sqrt(jnp.maximum(var, 0.0))

    # ---- head: embed_a -> relu -> (norm_a folded into wb) -> embed_b -> F.normalize.
    a = (jnp.dot(mean.astype(jnp.bfloat16), wam_ref[...],
                 preferred_element_type=jnp.float32)
         + jnp.dot(std.astype(jnp.bfloat16), was_ref[...],
                   preferred_element_type=jnp.float32)
         + ba_ref[...])
    hh = jnp.maximum(a, 0.0)
    e = jnp.dot(hh.astype(jnp.bfloat16), wb_ref[...],
                preferred_element_type=jnp.float32) + bb_ref[...]
    ss = jnp.sum(e * e, axis=-1, keepdims=True)
    # 1 / max(||e||, eps) == rsqrt(max(||e||^2, eps^2))  (EUP, no VPU divide)
    inv = jax.lax.rsqrt(jnp.maximum(ss, L2_EPS * L2_EPS))
    out_ref[...] = e * inv


# --------------------------- parameter init ----------------------------------

def _linear_params(key, din, dout, scale=0.05):
    kw, kb = jax.random.split(key)
    w = scale * jax.random.normal(kw, (din, dout), jnp.float32)   # (Din, Dout)
    b = scale * jax.random.normal(kb, (dout,), jnp.float32)
    return w, b


def _bn_affine(dim):
    # gamma=1, beta=0, running_mean=0, running_var=1  (PyTorch defaults)
    s = jnp.full((dim,), 1.0 / jnp.sqrt(1.0 + BN_EPS), jnp.float32)
    return s, jnp.zeros((dim,), jnp.float32)


def init_params(key, input_size, hidden_size, output_size, embedding_size,
                splice_indexes):
    params = {"tdnn": []}
    keys = jax.random.split(key, len(splice_indexes) + 4)
    for l, ctx in enumerate(splice_indexes):
        din = (input_size if l == 0 else hidden_size) * len(ctx)
        w, b = _linear_params(keys[l], din, hidden_size)
        s, sh = _bn_affine(hidden_size)
        params["tdnn"].append({"w": w, "b": b, "bn_scale": s, "bn_shift": sh})
    k = len(splice_indexes)
    w1, b1 = _linear_params(keys[k + 0], hidden_size, hidden_size)
    w2, b2 = _linear_params(keys[k + 1], hidden_size, output_size)
    s1, sh1 = _bn_affine(hidden_size)
    params["mlp"] = {"w1": w1, "b1": b1, "bn_scale": s1, "bn_shift": sh1,
                     "w2": w2, "b2": b2}
    wa, ba = _linear_params(keys[k + 2], output_size * 2, hidden_size)
    wb, bb = _linear_params(keys[k + 3], hidden_size, embedding_size)
    sa, sha = _bn_affine(hidden_size)
    params["head"] = {"wa": wa, "ba": ba, "bn_scale": sa, "bn_shift": sha,
                      "wb": wb, "bb": bb}
    return params


# ------------------- host-side padding + BN folding (bf16 weights) -----------

def _pad2(w, rows, cols):
    return jnp.zeros((rows, cols), jnp.float32).at[:w.shape[0], :w.shape[1]].set(w)


def _pad_row(v, cols):
    return jnp.zeros((1, cols), jnp.float32).at[0, :v.shape[0]].set(v)


def build_padded_params(params, splice_indexes, input_size, hidden_size,
                        output_size, embedding_size):
    """Fold every BN inference affine into the NEXT linear layer, pad every
    weight to 128-lane tiles and cast weights to bf16 (biases stay f32)."""
    dp = LANE
    ep = _round_up(embedding_size, LANE)
    flat = []

    prev_scale, prev_shift = None, None
    for l, (ctx, p) in enumerate(zip(splice_indexes, params["tdnn"])):
        din = input_size if l == 0 else hidden_size
        n_ctx = len(ctx)
        assert n_ctx * din <= dp, (
            "context packing needs n_ctx*din <= 128")  # TODO(synk): fall back
            # to per-context matmuls for wider splices.
        w = p["w"]                                  # (n_ctx*din, hidden)
        b = p["b"]
        if prev_scale is not None:                  # fold previous layer's BN
            scale_rows = jnp.tile(prev_scale, n_ctx)
            shift_rows = jnp.tile(prev_shift, n_ctx)
            b = b + shift_rows @ w
            w = w * scale_rows[:, None]
        flat.append(_pad2(w, dp, dp).astype(jnp.bfloat16))
        flat.append(_pad_row(b, dp))
        prev_scale, prev_shift = p["bn_scale"], p["bn_shift"]

    m = params["mlp"]
    w1, b1 = m["w1"], m["b1"]
    b1 = b1 + prev_shift @ w1                       # fold last TDNN BN
    w1 = w1 * prev_scale[:, None]
    w2, b2 = m["w2"], m["b2"]
    b2 = b2 + m["bn_shift"] @ w2                    # fold MLP-internal BN
    w2 = w2 * m["bn_scale"][:, None]
    flat += [_pad2(w1, dp, dp).astype(jnp.bfloat16), _pad_row(b1, dp),
             _pad2(w2, dp, dp).astype(jnp.bfloat16), _pad_row(b2, dp)]

    hd = params["head"]
    wa, ba = hd["wa"], hd["ba"]                     # (2*output_size, hidden)
    wa_mean = wa[:output_size, :]                   # split: no concat in-kernel
    wa_std = wa[output_size:, :]
    wb, bbias = hd["wb"], hd["bb"]
    bbias = bbias + hd["bn_shift"] @ wb             # fold norm_a BN
    wb = wb * hd["bn_scale"][:, None]
    flat += [_pad2(wa_mean, dp, dp).astype(jnp.bfloat16),
             _pad2(wa_std, dp, dp).astype(jnp.bfloat16),
             _pad_row(ba, dp),
             _pad2(wb, dp, ep).astype(jnp.bfloat16),
             _pad_row(bbias, ep)]
    return flat, ep


# ------------------------------- forward --------------------------------------

def _pick_bb(b):
    """Batch rows per grid step: multiples of 8, >=2 grid steps when possible."""
    if b < 16:
        return b
    for cand in (32, 24, 16, 8):
        if b % cand == 0 and b // cand >= 2:
            return cand
    return b


def xvector_forward(params, x, splice_indexes, *, input_size, hidden_size,
                    output_size, embedding_size):
    b, t0, fin = x.shape
    assert fin == input_size
    dp = LANE

    left_total = sum(-min(0, min(c)) for c in splice_indexes)
    right_total = sum(max(0, max(c)) for c in splice_indexes)
    t_valid = t0 - left_total - right_total
    assert t_valid >= 2, "need >= 2 pooled frames for unbiased std"

    # Pad features to 128 lanes and time to a multiple of 8 sublanes, then
    # flatten batch*time (contiguous -> free).  Zero feature lanes stay zero
    # through the whole network (padded weight rows/cols and biases are 0).
    t0p = _round_up(t0, 8)
    xp = jnp.zeros((b, t0p, dp), jnp.float32).at[:, :t0, :fin].set(x)
    x_flat = xp.reshape(b * t0p, dp)

    flat_params, ep = build_padded_params(
        params, splice_indexes, input_size, hidden_size, output_size,
        embedding_size)

    bb = _pick_bb(b)
    grid = (b // bb,)

    in_specs = [pl.BlockSpec((bb * t0p, dp), lambda i: (i, 0))]
    for a in flat_params:
        in_specs.append(pl.BlockSpec(a.shape, (lambda i, n=a.ndim: (0,) * n)))
    out_spec = pl.BlockSpec((bb, ep), lambda i: (i, 0))

    layer_dins = tuple(input_size if l == 0 else hidden_size
                       for l in range(len(splice_indexes)))
    kernel = functools.partial(
        _xvector_fused_kernel,
        splice_indexes=tuple(tuple(c) for c in splice_indexes),
        layer_dins=layer_dins, t0p=t0p, t_valid=t_valid,
        left_total=left_total)

    out_pad = pl.pallas_call(
        kernel,
        out_shape=jax.ShapeDtypeStruct((b, ep), jnp.float32),
        grid=grid,
        in_specs=in_specs,
        out_specs=out_spec,
        compiler_params=pltpu.CompilerParams(
            dimension_semantics=("parallel",)),
    )(x_flat, *flat_params)

    # Padded embedding lanes are exactly zero; drop them.
    return out_pad[:, :embedding_size]


# --------------------------------- main ---------------------------------------

if __name__ == "__main__":
    # Small config consistent with XvectorNet(input_size, hidden_size,
    # output_size, embedding_size, splice_indexes)
    INPUT_SIZE = 16
    HIDDEN_SIZE = 32
    OUTPUT_SIZE = 32
    EMBEDDING_SIZE = 16
    SPLICE_INDEXES = [[-2, -1, 0, 1, 2], [-2, 0, 2], [0]]   # extra_context = (4, 4)

    B, T = 2, 24   # T - (left + right) = 16 frames reach the stats pooling

    key = jax.random.PRNGKey(0)
    kx, kp = jax.random.split(key)
    x = jax.random.normal(kx, (B, T, INPUT_SIZE), jnp.float32)

    params = init_params(kp, INPUT_SIZE, HIDDEN_SIZE, OUTPUT_SIZE,
                         EMBEDDING_SIZE, SPLICE_INDEXES)

    logit = xvector_forward(params, x, SPLICE_INDEXES,
                            input_size=INPUT_SIZE, hidden_size=HIDDEN_SIZE,
                            output_size=OUTPUT_SIZE,
                            embedding_size=EMBEDDING_SIZE)
    logit = jax.block_until_ready(logit)

    assert logit.shape == (B, EMBEDDING_SIZE)
    # rows are L2-normalized
    norms = jnp.linalg.norm(logit, axis=1)
    assert bool(jnp.all(jnp.abs(norms - 1.0) < 1e-4))
    print("KERNEL_OK")
</pallas_src>

<mosaic_0001>
module attributes {stable_mosaic.version = 11 : i64} {
  func.func @_xvector_fused_kernel(%arg0: i32, %arg1: memref<48x128xf32, #tpu.memory_space<vmem>>, %arg2: memref<128x128xbf16, #tpu.memory_space<vmem>>, %arg3: memref<1x128xf32, #tpu.memory_space<vmem>>, %arg4: memref<128x128xbf16, #tpu.memory_space<vmem>>, %arg5: memref<1x128xf32, #tpu.memory_space<vmem>>, %arg6: memref<128x128xbf16, #tpu.memory_space<vmem>>, %arg7: memref<1x128xf32, #tpu.memory_space<vmem>>, %arg8: memref<128x128xbf16, #tpu.memory_space<vmem>>, %arg9: memref<1x128xf32, #tpu.memory_space<vmem>>, %arg10: memref<128x128xbf16, #tpu.memory_space<vmem>>, %arg11: memref<1x128xf32, #tpu.memory_space<vmem>>, %arg12: memref<128x128xbf16, #tpu.memory_space<vmem>>, %arg13: memref<128x128xbf16, #tpu.memory_space<vmem>>, %arg14: memref<1x128xf32, #tpu.memory_space<vmem>>, %arg15: memref<128x128xbf16, #tpu.memory_space<vmem>>, %arg16: memref<1x128xf32, #tpu.memory_space<vmem>>, %arg17: memref<2x128xf32, #tpu.memory_space<vmem>>) attributes {dimension_semantics = [#tpu.dimension_semantics<parallel>], iteration_bounds = array<i64: 1>, scalar_prefetch = 0 : i64, scratch_operands = 0 : i64, tpu.core_type = #tpu.core_type<tc>, window_params = [{transform_indices = @transform_0, window_bounds = array<i64: 48, 128>}, {pipeline_mode = #tpu.pipeline_mode<synchronous>, transform_indices = @transform_1, window_bounds = array<i64: 128, 128>}, {pipeline_mode = #tpu.pipeline_mode<synchronous>, transform_indices = @transform_2, window_bounds = array<i64: 1, 128>}, {pipeline_mode = #tpu.pipeline_mode<synchronous>, transform_indices = @transform_3, window_bounds = array<i64: 128, 128>}, {pipeline_mode = #tpu.pipeline_mode<synchronous>, transform_indices = @transform_4, window_bounds = array<i64: 1, 128>}, {pipeline_mode = #tpu.pipeline_mode<synchronous>, transform_indices = @transform_5, window_bounds = array<i64: 128, 128>}, {pipeline_mode = #tpu.pipeline_mode<synchronous>, transform_indices = @transform_6, window_bounds = array<i64: 1, 128>}, {pipeline_mode = #tpu.pipeline_mode<synchronous>, transform_indices = @transform_7, window_bounds = array<i64: 128, 128>}, {pipeline_mode = #tpu.pipeline_mode<synchronous>, transform_indices = @transform_8, window_bounds = array<i64: 1, 128>}, {pipeline_mode = #tpu.pipeline_mode<synchronous>, transform_indices = @transform_9, window_bounds = array<i64: 128, 128>}, {pipeline_mode = #tpu.pipeline_mode<synchronous>, transform_indices = @transform_10, window_bounds = array<i64: 1, 128>}, {pipeline_mode = #tpu.pipeline_mode<synchronous>, transform_indices = @transform_11, window_bounds = array<i64: 128, 128>}, {pipeline_mode = #tpu.pipeline_mode<synchronous>, transform_indices = @transform_12, window_bounds = array<i64: 128, 128>}, {pipeline_mode = #tpu.pipeline_mode<synchronous>, transform_indices = @transform_13, window_bounds = array<i64: 1, 128>}, {pipeline_mode = #tpu.pipeline_mode<synchronous>, transform_indices = @transform_14, window_bounds = array<i64: 128, 128>}, {pipeline_mode = #tpu.pipeline_mode<synchronous>, transform_indices = @transform_15, window_bounds = array<i64: 1, 128>}, {transform_indices = @transform_16, window_bounds = array<i64: 2, 128>}]} {
    %c0 = arith.constant 0 : index
    %c0_0 = arith.constant 0 : index
    %0 = vector.load %arg1[%c0, %c0_0] : memref<48x128xf32, #tpu.memory_space<vmem>>, vector<48x128xf32>
    %c2_i32 = arith.constant 2 : i32
    %1 = tpu.dynamic_rotate %0 by %c2_i32 dim 0 : vector<48x128xf32>, i32 -> vector<48x128xf32>
    %c1_i32 = arith.constant 1 : i32
    %2 = tpu.dynamic_rotate %0 by %c1_i32 dim 0 : vector<48x128xf32>, i32 -> vector<48x128xf32>
    %c16_i32 = arith.constant 16 : i32
    %3 = tpu.dynamic_rotate %2 by %c16_i32 dim 1 : vector<48x128xf32>, i32 -> vector<48x128xf32>
    %4 = arith.addf %1, %3 : vector<48x128xf32>
    %c32_i32 = arith.constant 32 : i32
    %5 = tpu.dynamic_rotate %0 by %c32_i32 dim 1 : vector<48x128xf32>, i32 -> vector<48x128xf32>
    %6 = arith.addf %4, %5 : vector<48x128xf32>
    %c47_i32 = arith.constant 47 : i32
    %7 = tpu.dynamic_rotate %0 by %c47_i32 dim 0 : vector<48x128xf32>, i32 -> vector<48x128xf32>
    %c48_i32 = arith.constant 48 : i32
    %8 = tpu.dynamic_rotate %7 by %c48_i32 dim 1 : vector<48x128xf32>, i32 -> vector<48x128xf32>
    %9 = arith.addf %6, %8 : vector<48x128xf32>
    %c46_i32 = arith.constant 46 : i32
    %10 = tpu.dynamic_rotate %0 by %c46_i32 dim 0 : vector<48x128xf32>, i32 -> vector<48x128xf32>
    %c64_i32 = arith.constant 64 : i32
    %11 = tpu.dynamic_rotate %10 by %c64_i32 dim 1 : vector<48x128xf32>, i32 -> vector<48x128xf32>
    %12 = arith.addf %9, %11 : vector<48x128xf32>
    %13 = arith.truncf %12 : vector<48x128xf32> to vector<48x128xbf16>
    %c0_1 = arith.constant 0 : index
    %c0_2 = arith.constant 0 : index
    %14 = vector.load %arg2[%c0_1, %c0_2] : memref<128x128xbf16, #tpu.memory_space<vmem>>, vector<128x128xbf16>
    %cst = arith.constant dense<0.000000e+00> : vector<48x128xf32>
    %15 = tpu.matmul %13, %14, %cst {dimension_numbers = #tpu.dot_dimension_numbers<[1], [0], [0], [1], [0, 0, 1, 1], [], []>} : vector<48x128xbf16>, vector<128x128xbf16>, vector<48x128xf32> -> vector<48x128xf32>
    %c0_3 = arith.constant 0 : index
    %c0_4 = arith.constant 0 : index
    %16 = vector.load %arg3[%c0_3, %c0_4] : memref<1x128xf32, #tpu.memory_space<vmem>>, vector<1x128xf32>
    %17 = vector.broadcast %16 : vector<1x128xf32> to vector<48x128xf32>
    %18 = arith.addf %15, %17 : vector<48x128xf32>
    %cst_5 = arith.constant 0.000000e+00 : f32
    %19 = vector.broadcast %cst_5 : f32 to vector<48x128xf32>
    %20 = arith.maximumf %18, %19 : vector<48x128xf32>
    %c2_i32_6 = arith.constant 2 : i32
    %21 = tpu.dynamic_rotate %20 by %c2_i32_6 dim 0 : vector<48x128xf32>, i32 -> vector<48x128xf32>
    %c32_i32_7 = arith.constant 32 : i32
    %22 = tpu.dynamic_rotate %20 by %c32_i32_7 dim 1 : vector<48x128xf32>, i32 -> vector<48x128xf32>
    %23 = arith.addf %21, %22 : vector<48x128xf32>
    %c46_i32_8 = arith.constant 46 : i32
    %24 = tpu.dynamic_rotate %20 by %c46_i32_8 dim 0 : vector<48x128xf32>, i32 -> vector<48x128xf32>
    %c64_i32_9 = arith.constant 64 : i32
    %25 = tpu.dynamic_rotate %24 by %c64_i32_9 dim 1 : vector<48x128xf32>, i32 -> vector<48x128xf32>
    %26 = arith.addf %23, %25 : vector<48x128xf32>
    %27 = arith.truncf %26 : vector<48x128xf32> to vector<48x128xbf16>
    %c0_10 = arith.constant 0 : index
    %c0_11 = arith.constant 0 : index
    %28 = vector.load %arg4[%c0_10, %c0_11] : memref<128x128xbf16, #tpu.memory_space<vmem>>, vector<128x128xbf16>
    %cst_12 = arith.constant dense<0.000000e+00> : vector<48x128xf32>
    %29 = tpu.matmul %27, %28, %cst_12 {dimension_numbers = #tpu.dot_dimension_numbers<[1], [0], [0], [1], [0, 0, 1, 1], [], []>} : vector<48x128xbf16>, vector<128x128xbf16>, vector<48x128xf32> -> vector<48x128xf32>
    %c0_13 = arith.constant 0 : index
    %c0_14 = arith.constant 0 : index
    %30 = vector.load %arg5[%c0_13, %c0_14] : memref<1x128xf32, #tpu.memory_space<vmem>>, vector<1x128xf32>
    %31 = vector.broadcast %30 : vector<1x128xf32> to vector<48x128xf32>
    %32 = arith.addf %29, %31 : vector<48x128xf32>
    %cst_15 = arith.constant 0.000000e+00 : f32
    %33 = vector.broadcast %cst_15 : f32 to vector<48x128xf32>
    %34 = arith.maximumf %32, %33 : vector<48x128xf32>
    %35 = arith.truncf %34 : vector<48x128xf32> to vector<48x128xbf16>
    %c0_16 = arith.constant 0 : index
    %c0_17 = arith.constant 0 : index
    %36 = vector.load %arg6[%c0_16, %c0_17] : memref<128x128xbf16, #tpu.memory_space<vmem>>, vector<128x128xbf16>
    %cst_18 = arith.constant dense<0.000000e+00> : vector<48x128xf32>
    %37 = tpu.matmul %35, %36, %cst_18 {dimension_numbers = #tpu.dot_dimension_numbers<[1], [0], [0], [1], [0, 0, 1, 1], [], []>} : vector<48x128xbf16>, vector<128x128xbf16>, vector<48x128xf32> -> vector<48x128xf32>
    %c0_19 = arith.constant 0 : index
    %c0_20 = arith.constant 0 : index
    %38 = vector.load %arg7[%c0_19, %c0_20] : memref<1x128xf32, #tpu.memory_space<vmem>>, vector<1x128xf32>
    %39 = vector.broadcast %38 : vector<1x128xf32> to vector<48x128xf32>
    %40 = arith.addf %37, %39 : vector<48x128xf32>
    %cst_21 = arith.constant 0.000000e+00 : f32
    %41 = vector.broadcast %cst_21 : f32 to vector<48x128xf32>
    %42 = arith.maximumf %40, %41 : vector<48x128xf32>
    %43 = arith.truncf %42 : vector<48x128xf32> to vector<48x128xbf16>
    %c0_22 = arith.constant 0 : index
    %c0_23 = arith.constant 0 : index
    %44 = vector.load %arg8[%c0_22, %c0_23] : memref<128x128xbf16, #tpu.memory_space<vmem>>, vector<128x128xbf16>
    %cst_24 = arith.constant dense<0.000000e+00> : vector<48x128xf32>
    %45 = tpu.matmul %43, %44, %cst_24 {dimension_numbers = #tpu.dot_dimension_numbers<[1], [0], [0], [1], [0, 0, 1, 1], [], []>} : vector<48x128xbf16>, vector<128x128xbf16>, vector<48x128xf32> -> vector<48x128xf32>
    %c0_25 = arith.constant 0 : index
    %c0_26 = arith.constant 0 : index
    %46 = vector.load %arg9[%c0_25, %c0_26] : memref<1x128xf32, #tpu.memory_space<vmem>>, vector<1x128xf32>
    %47 = vector.broadcast %46 : vector<1x128xf32> to vector<48x128xf32>
    %48 = arith.addf %45, %47 : vector<48x128xf32>
    %cst_27 = arith.constant 0.000000e+00 : f32
    %49 = vector.broadcast %cst_27 : f32 to vector<48x128xf32>
    %50 = arith.maximumf %48, %49 : vector<48x128xf32>
    %51 = arith.truncf %50 : vector<48x128xf32> to vector<48x128xbf16>
    %c0_28 = arith.constant 0 : index
    %c0_29 = arith.constant 0 : index
    %52 = vector.load %arg10[%c0_28, %c0_29] : memref<128x128xbf16, #tpu.memory_space<vmem>>, vector<128x128xbf16>
    %cst_30 = arith.constant dense<0.000000e+00> : vector<48x128xf32>
    %53 = tpu.matmul %51, %52, %cst_30 {dimension_numbers = #tpu.dot_dimension_numbers<[1], [0], [0], [1], [0, 0, 1, 1], [], []>} : vector<48x128xbf16>, vector<128x128xbf16>, vector<48x128xf32> -> vector<48x128xf32>
    %c0_31 = arith.constant 0 : index
    %c0_32 = arith.constant 0 : index
    %54 = vector.load %arg11[%c0_31, %c0_32] : memref<1x128xf32, #tpu.memory_space<vmem>>, vector<1x128xf32>
    %55 = vector.broadcast %54 : vector<1x128xf32> to vector<48x128xf32>
    %56 = arith.addf %53, %55 : vector<48x128xf32>
    %57 = vector.shape_cast %56 : vector<48x128xf32> to vector<2x24x128xf32>
    %58 = vector.extract_strided_slice %57 {offsets = [0, 4, 0], sizes = [2, 16, 128], strides = [1, 1, 1]} : vector<2x24x128xf32> to vector<2x16x128xf32>
    %cst_33 = arith.constant dense<0.000000e+00> : vector<2x128xf32>
    %59 = vector.multi_reduction <add>, %58, %cst_33 [1] : vector<2x16x128xf32> to vector<2x128xf32>
    %60 = arith.mulf %58, %58 : vector<2x16x128xf32>
    %cst_34 = arith.constant dense<0.000000e+00> : vector<2x128xf32>
    %61 = vector.multi_reduction <add>, %60, %cst_34 [1] : vector<2x16x128xf32> to vector<2x128xf32>
    %cst_35 = arith.constant 6.250000e-02 : f32
    %62 = vector.broadcast %cst_35 : f32 to vector<2x128xf32>
    %63 = arith.mulf %59, %62 : vector<2x128xf32>
    %64 = arith.mulf %63, %59 : vector<2x128xf32>
    %65 = arith.subf %61, %64 : vector<2x128xf32>
    %cst_36 = arith.constant 1.500000e+01 : f32
    %66 = vector.broadcast %cst_36 : f32 to vector<2x128xf32>
    %67 = arith.divf %65, %66 : vector<2x128xf32>
    %cst_37 = arith.constant 0.000000e+00 : f32
    %68 = vector.broadcast %cst_37 : f32 to vector<2x128xf32>
    %69 = arith.maximumf %67, %68 : vector<2x128xf32>
    %70 = math.sqrt %69 : vector<2x128xf32>
    %71 = arith.truncf %63 : vector<2x128xf32> to vector<2x128xbf16>
    %c0_38 = arith.constant 0 : index
    %c0_39 = arith.constant 0 : index
    %72 = vector.load %arg12[%c0_38, %c0_39] : memref<128x128xbf16, #tpu.memory_space<vmem>>, vector<128x128xbf16>
    %cst_40 = arith.constant dense<0.000000e+00> : vector<2x128xf32>
    %73 = tpu.matmul %71, %72, %cst_40 {dimension_numbers = #tpu.dot_dimension_numbers<[1], [0], [0], [1], [0, 0, 1, 1], [], []>} : vector<2x128xbf16>, vector<128x128xbf16>, vector<2x128xf32> -> vector<2x128xf32>
    %74 = arith.truncf %70 : vector<2x128xf32> to vector<2x128xbf16>
    %c0_41 = arith.constant 0 : index
    %c0_42 = arith.constant 0 : index
    %75 = vector.load %arg13[%c0_41, %c0_42] : memref<128x128xbf16, #tpu.memory_space<vmem>>, vector<128x128xbf16>
    %cst_43 = arith.constant dense<0.000000e+00> : vector<2x128xf32>
    %76 = tpu.matmul %74, %75, %cst_43 {dimension_numbers = #tpu.dot_dimension_numbers<[1], [0], [0], [1], [0, 0, 1, 1], [], []>} : vector<2x128xbf16>, vector<128x128xbf16>, vector<2x128xf32> -> vector<2x128xf32>
    %77 = arith.addf %73, %76 : vector<2x128xf32>
    %c0_44 = arith.constant 0 : index
    %c0_45 = arith.constant 0 : index
    %78 = vector.load %arg14[%c0_44, %c0_45] : memref<1x128xf32, #tpu.memory_space<vmem>>, vector<1x128xf32>
    %79 = vector.broadcast %78 : vector<1x128xf32> to vector<2x128xf32>
    %80 = arith.addf %77, %79 : vector<2x128xf32>
    %cst_46 = arith.constant 0.000000e+00 : f32
    %81 = vector.broadcast %cst_46 : f32 to vector<2x128xf32>
    %82 = arith.maximumf %80, %81 : vector<2x128xf32>
    %83 = arith.truncf %82 : vector<2x128xf32> to vector<2x128xbf16>
    %c0_47 = arith.constant 0 : index
    %c0_48 = arith.constant 0 : index
    %84 = vector.load %arg15[%c0_47, %c0_48] : memref<128x128xbf16, #tpu.memory_space<vmem>>, vector<128x128xbf16>
    %cst_49 = arith.constant dense<0.000000e+00> : vector<2x128xf32>
    %85 = tpu.matmul %83, %84, %cst_49 {dimension_numbers = #tpu.dot_dimension_numbers<[1], [0], [0], [1], [0, 0, 1, 1], [], []>} : vector<2x128xbf16>, vector<128x128xbf16>, vector<2x128xf32> -> vector<2x128xf32>
    %c0_50 = arith.constant 0 : index
    %c0_51 = arith.constant 0 : index
    %86 = vector.load %arg16[%c0_50, %c0_51] : memref<1x128xf32, #tpu.memory_space<vmem>>, vector<1x128xf32>
    %87 = vector.broadcast %86 : vector<1x128xf32> to vector<2x128xf32>
    %88 = arith.addf %85, %87 : vector<2x128xf32>
    %89 = arith.mulf %88, %88 : vector<2x128xf32>
    %cst_52 = arith.constant dense<0.000000e+00> : vector<2xf32>
    %90 = vector.multi_reduction <add>, %89, %cst_52 [1] : vector<2x128xf32> to vector<2xf32>
    %91 = vector.shape_cast %90 : vector<2xf32> to vector<2x1xf32>
    %cst_53 = arith.constant 1.000000e-24 : f32
    %92 = vector.broadcast %cst_53 : f32 to vector<2x1xf32>
    %93 = arith.maximumf %91, %92 : vector<2x1xf32>
    %94 = math.rsqrt %93 : vector<2x1xf32>
    %95 = vector.broadcast %94 : vector<2x1xf32> to vector<2x128xf32>
    %96 = arith.mulf %88, %95 : vector<2x128xf32>
    %c0_54 = arith.constant 0 : index
    %c0_55 = arith.constant 0 : index
    %97 = vector.load %arg17[%c0_54, %c0_55] : memref<2x128xf32, #tpu.memory_space<vmem>>, vector<2x128xf32>
    tpu.vector_store %arg17[%c0_54, %c0_55], %96 {strides = array<i32>} : memref<2x128xf32, #tpu.memory_space<vmem>>, vector<2x128xf32>,
    return
  }
  func.func @transform_0(%arg0: i32) -> (i32, i32) {
    %c0_i32 = arith.constant 0 : i32
    %c0_i32_0 = arith.constant 0 : i32
    return %arg0, %c0_i32 : i32, i32
  }
  func.func @transform_1(%arg0: i32) -> (i32, i32) {
    %c0_i32 = arith.constant 0 : i32
    %c0_i32_0 = arith.constant 0 : i32
    %c0_i32_1 = arith.constant 0 : i32
    return %c0_i32, %c0_i32_0 : i32, i32
  }
  func.func @transform_2(%arg0: i32) -> (i32, i32) {
    %c0_i32 = arith.constant 0 : i32
    %c0_i32_0 = arith.constant 0 : i32
    %c0_i32_1 = arith.constant 0 : i32
    return %c0_i32, %c0_i32_0 : i32, i32
  }
  func.func @transform_3(%arg0: i32) -> (i32, i32) {
    %c0_i32 = arith.constant 0 : i32
    %c0_i32_0 = arith.constant 0 : i32
    %c0_i32_1 = arith.constant 0 : i32
    return %c0_i32, %c0_i32_0 : i32, i32
  }
  func.func @transform_4(%arg0: i32) -> (i32, i32) {
    %c0_i32 = arith.constant 0 : i32
    %c0_i32_0 = arith.constant 0 : i32
    %c0_i32_1 = arith.constant 0 : i32
    return %c0_i32, %c0_i32_0 : i32, i32
  }
  func.func @transform_5(%arg0: i32) -> (i32, i32) {
    %c0_i32 = arith.constant 0 : i32
    %c0_i32_0 = arith.constant 0 : i32
    %c0_i32_1 = arith.constant 0 : i32
    return %c0_i32, %c0_i32_0 : i32, i32
  }
  func.func @transform_6(%arg0: i32) -> (i32, i32) {
    %c0_i32 = arith.constant 0 : i32
    %c0_i32_0 = arith.constant 0 : i32
    %c0_i32_1 = arith.constant 0 : i32
    return %c0_i32, %c0_i32_0 : i32, i32
  }
  func.func @transform_7(%arg0: i32) -> (i32, i32) {
    %c0_i32 = arith.constant 0 : i32
    %c0_i32_0 = arith.constant 0 : i32
    %c0_i32_1 = arith.constant 0 : i32
    return %c0_i32, %c0_i32_0 : i32, i32
  }
  func.func @transform_8(%arg0: i32) -> (i32, i32) {
    %c0_i32 = arith.constant 0 : i32
    %c0_i32_0 = arith.constant 0 : i32
    %c0_i32_1 = arith.constant 0 : i32
    return %c0_i32, %c0_i32_0 : i32, i32
  }
  func.func @transform_9(%arg0: i32) -> (i32, i32) {
    %c0_i32 = arith.constant 0 : i32
    %c0_i32_0 = arith.constant 0 : i32
    %c0_i32_1 = arith.constant 0 : i32
    return %c0_i32, %c0_i32_0 : i32, i32
  }
  func.func @transform_10(%arg0: i32) -> (i32, i32) {
    %c0_i32 = arith.constant 0 : i32
    %c0_i32_0 = arith.constant 0 : i32
    %c0_i32_1 = arith.constant 0 : i32
    return %c0_i32, %c0_i32_0 : i32, i32
  }
  func.func @transform_11(%arg0: i32) -> (i32, i32) {
    %c0_i32 = arith.constant 0 : i32
    %c0_i32_0 = arith.constant 0 : i32
    %c0_i32_1 = arith.constant 0 : i32
    return %c0_i32, %c0_i32_0 : i32, i32
  }
  func.func @transform_12(%arg0: i32) -> (i32, i32) {
    %c0_i32 = arith.constant 0 : i32
    %c0_i32_0 = arith.constant 0 : i32
    %c0_i32_1 = arith.constant 0 : i32
    return %c0_i32, %c0_i32_0 : i32, i32
  }
  func.func @transform_13(%arg0: i32) -> (i32, i32) {
    %c0_i32 = arith.constant 0 : i32
    %c0_i32_0 = arith.constant 0 : i32
    %c0_i32_1 = arith.constant 0 : i32
    return %c0_i32, %c0_i32_0 : i32, i32
  }
  func.func @transform_14(%arg0: i32) -> (i32, i32) {
    %c0_i32 = arith.constant 0 : i32
    %c0_i32_0 = arith.constant 0 : i32
    %c0_i32_1 = arith.constant 0 : i32
    return %c0_i32, %c0_i32_0 : i32, i32
  }
  func.func @transform_15(%arg0: i32) -> (i32, i32) {
    %c0_i32 = arith.constant 0 : i32
    %c0_i32_0 = arith.constant 0 : i32
    %c0_i32_1 = arith.constant 0 : i32
    return %c0_i32, %c0_i32_0 : i32, i32
  }
  func.func @transform_16(%arg0: i32) -> (i32, i32) {
    %c0_i32 = arith.constant 0 : i32
    %c0_i32_0 = arith.constant 0 : i32
    return %arg0, %c0_i32 : i32, i32
  }
}

</mosaic_0001>

<bundles_post_ra>
// kernel: tpu_custom_call.1
= control target key start
LH: loop header
LB: loop body
LE: loop exit
PB: predicated region body
PF: predicated region fallthrough
CT: control target
= control target key end

     0   :  { %s2683_s0 = inlined_call_operand.hbm [shape: f32[48,128], index: 0, kind: input, shape index: {}]   ;;  %s2684_s1 = inlined_call_operand.hbm [shape: bf16[128,128], index: 1, kind: input, shape index: {}]   ;;  %s2685_s2 = inlined_call_operand.vmem [shape: f32[1,128], index: 2, kind: input, shape index: {}]   ;;  %s2686_s3 = inlined_call_operand.hbm [shape: bf16[128,128], index: 3, kind: input, shape index: {}]   ;;  %s2687_s4 = inlined_call_operand.vmem [shape: f32[1,128], index: 4, kind: input, shape index: {}]   ;;  %s2688_s5 = inlined_call_operand.hbm [shape: bf16[128,128], index: 5, kind: input, shape index: {}]   ;;  %s2689_s6 = inlined_call_operand.vmem [shape: f32[1,128], index: 6, kind: input, shape index: {}]   ;;  %s2690_s7 = inlined_call_operand.hbm [shape: bf16[128,128], index: 7, kind: input, shape index: {}]   ;;  %s2691_s8 = inlined_call_operand.vmem [shape: f32[1,128], index: 8, kind: input, shape index: {}]   ;;  %s2692_s9 = inlined_call_operand.hbm [shape: bf16[128,128], index: 9, kind: input, shape index: {}]   ;;  %s2693_s10 = inlined_call_operand.vmem [shape: f32[1,128], index: 10, kind: input, shape index: {}]   ;;  %s2694_s11 = inlined_call_operand.hbm [shape: bf16[128,128], index: 11, kind: input, shape index: {}]   ;;  %s2695_s12 = inlined_call_operand.hbm [shape: bf16[128,128], index: 12, kind: input, shape index: {}]   ;;  %s2696_s13 = inlined_call_operand.vmem [shape: f32[1,128], index: 13, kind: input, shape index: {}]   ;;  %s2697_s14 = inlined_call_operand.hbm [shape: bf16[128,128], index: 14, kind: input, shape index: {}]   ;;  %s2698_s15 = inlined_call_operand.vmem [shape: f32[1,128], index: 15, kind: input, shape index: {}]   ;;  %s2699_s16 = inlined_call_operand.hbm [shape: f32[2,128], index: 16, kind: output, shape index: {}]  }
   0x1   :  { %2700 = sst [smem:[#allocation24_spill]] %s2683_s0 }
   0x2   :  { %21 = vsyncpa [#allocation3], 0 }
   0x3   :  { %22 = vsyncpa [#allocation6], 0 }
   0x4   :  { %23 = vsyncpa [#allocation9], 0 }
   0x5   :  { %24 = vsyncpa [#allocation12], 0 }
   0x6   :  { %25 = vsyncpa [#allocation15], 0 }
   0x7   :  { %26 = vsyncpa [#allocation4], 0  ;;  %s2178_s21 = smov [#allocation5]  }
   0x8   :  { %s44_s22 = sshll.u32 %s2178_s21, 4  ;;  %s45_s22 = int_to_ptr.vmem [resolvable:$true] %s44_s22 }
   0x9   :  { %s1974_s23 = scalar_lea.vmem %s45_s22, 1024  ;;  %p1979_p1 = scmp.lt.s32.totalorder %s45_s22, %s45_s22 }
   0xa   :  { %p1975_p0 = scmp.ne.s32.totalorder %s45_s22, %s1974_s23  ;;  %p1980_p2 = scmp.lt.s32.totalorder %s1974_s23, %s1974_s23 }
   0xc   :  { %p1981_p3 = por %p1980_p2, %p1979_p1 }
   0xe   :  { %p1982_p4 = pnand %p1981_p3, %p1975_p0 }
  0x10   :  { %1985 = shalt.err (!%p1982_p4)
}
  0x11   :  { %s2179_s24 = smov 64   ;;  %s2180_s25 = smov 4  }
  0x12   :  { %50 = dma.hbm_to_vmem [thread:$0]  %s2684_s1, 1024, %s45_s22, [#allocation6], %s2179_s24, %s2179_s24, %s2180_s25  }
  0x13   :  { %s2181_s28 = smov [#allocation8]   ;;  %s2182_s30 = smov [#allocation11]  }
  0x14   :  { %s72_s29 = sshll.u32 %s2181_s28, 4  ;;  %s100_s0 = sshll.u32 %s2182_s30, 4  ;;  %s73_s29 = int_to_ptr.vmem [resolvable:$true] %s72_s29  ;;  %s101_s0 = int_to_ptr.vmem [resolvable:$true] %s100_s0 }
  0x15   :  { %s1994_s17 = scalar_lea.vmem %s73_s29, 1024  ;;  %p1999_p6 = scmp.lt.s32.totalorder %s73_s29, %s73_s29 }
  0x16   :  { %p1995_p5 = scmp.ne.s32.totalorder %s73_s29, %s1994_s17  ;;  %p2000_p7 = scmp.lt.s32.totalorder %s1994_s17, %s1994_s17 }
  0x18   :  { %p2001_p8 = por %p2000_p7, %p1999_p6 }
  0x1a   :  { %p2002_p9 = pnand %p2001_p8, %p1995_p5 }
  0x1c   :  { %2005 = shalt.err (!%p2002_p9)
}
  0x1d   :  { %78 = dma.hbm_to_vmem [thread:$0]  %s2688_s5, 1024, %s73_s29, [#allocation9], %s2179_s24, %s2179_s24, %s2180_s25  }
  0x1e   :  { %s2014_s1 = scalar_lea.vmem %s101_s0, 1024  ;;  %p2019_p11 = scmp.lt.s32.totalorder %s101_s0, %s101_s0 }
  0x1f   :  { %p2015_p10 = scmp.ne.s32.totalorder %s101_s0, %s2014_s1  ;;  %p2020_p12 = scmp.lt.s32.totalorder %s2014_s1, %s2014_s1 }
  0x21   :  { %p2021_p13 = por %p2020_p12, %p2019_p11 }
  0x23   :  { %p2022_p0 = pnand %p2021_p13, %p2015_p10 }
  0x25   :  { %2025 = shalt.err (!%p2022_p0)
}
  0x26   :  { %106 = dma.hbm_to_vmem [thread:$0]  %s2692_s9, 1024, %s101_s0, [#allocation12], %s2179_s24, %s2179_s24, %s2180_s25  }
  0x27   :  { %s2183_s22 = smov [#allocation14]   ;;  %s2184_s26 = smov [#allocation2]  }
  0x28   :  { %s126_s23 = sshll.u32 %s2183_s22, 4  ;;  %s32_s5 = sshll.u32 %s2184_s26, 4  ;;  %s127_s23 = int_to_ptr.vmem [resolvable:$true] %s126_s23  ;;  %s33_s5 = int_to_ptr.vmem [resolvable:$true] %s32_s5 }
  0x29   :  { %s2034_s27 = scalar_lea.vmem %s127_s23, 1024  ;;  %p2039_p2 = scmp.lt.s32.totalorder %s127_s23, %s127_s23 }
  0x2a   :  { %p2035_p1 = scmp.ne.s32.totalorder %s127_s23, %s2034_s27  ;;  %p2040_p3 = scmp.lt.s32.totalorder %s2034_s27, %s2034_s27 }
  0x2c   :  { %p2041_p4 = por %p2040_p3, %p2039_p2 }
  0x2e   :  { %p2042_p5 = pnand %p2041_p4, %p2035_p1 }
  0x30   :  { %2045 = shalt.err (!%p2042_p5)
}
  0x31   :  { %132 = dma.hbm_to_vmem [thread:$0]  %s2695_s12, 1024, %s127_s23, [#allocation15], %s2179_s24, %s2179_s24, %s2180_s25  }
  0x32   :  { %s2054_s9 = scalar_lea.vmem %s33_s5, 768  ;;  %p2059_p7 = scmp.lt.s32.totalorder %s33_s5, %s33_s5 }
  0x33   :  { %p2055_p6 = scmp.ne.s32.totalorder %s33_s5, %s2054_s9  ;;  %p2060_p8 = scmp.lt.s32.totalorder %s2054_s9, %s2054_s9 }
  0x35   :  { %p2061_p9 = por %p2060_p8, %p2059_p7 }
  0x37   :  { %p2062_p10 = pnand %p2061_p9, %p2055_p6 }
  0x39   :  { %2065 = shalt.err (!%p2062_p10)
}
  0x3a   :  { %s2185_s30 = smov 128   ;;  %s2186_s0 = smov 8  }
  0x3b   :  { %s2701_s19 = sld [smem:[#allocation24_spill]]  ;;  %s2187_s1 = smov [#allocation7]  }
  0x3c   :  { %s58_s20 = sshll.u32 %s2187_s1, 4  ;;  %s2188_s21 = smov [#allocation10]   ;;  %s59_s20 = int_to_ptr.vmem [resolvable:$true] %s58_s20 }
  0x3d   :  { %s86_s22 = sshll.u32 %s2188_s21, 4  ;;  %s2074_s12 = scalar_lea.vmem %s59_s20, 1024  ;;  %s87_s22 = int_to_ptr.vmem [resolvable:$true] %s86_s22 }
  0x3e   :  { %p2075_p11 = scmp.ne.s32.totalorder %s59_s20, %s2074_s12  ;;  %p2079_p12 = scmp.lt.s32.totalorder %s59_s20, %s59_s20 }
  0x3f   :  { %p2080_p13 = scmp.lt.s32.totalorder %s2074_s12, %s2074_s12 }
  0x41   :  { %38 = dma.hbm_to_vmem [thread:$0]  %s2701_s19, 768, %s33_s5, [#allocation3], %s2185_s30, %s2185_s30, %s2186_s0  }
  0x42   :  { %p2081_p0 = por %p2080_p13, %p2079_p12 }
  0x44   :  { %p2082_p1 = pnand %p2081_p0, %p2075_p11 }
  0x46   :  { %2085 = shalt.err (!%p2082_p1)
}
  0x47   :  { %64 = dma.hbm_to_vmem [thread:$0]  %s2686_s3, 1024, %s59_s20, [#allocation6], %s2179_s24, %s2179_s24, %s2180_s25  }
  0x48   :  { %s2094_s5 = scalar_lea.vmem %s87_s22, 1024  ;;  %p2099_p3 = scmp.lt.s32.totalorder %s87_s22, %s87_s22 }
  0x49   :  { %p2095_p2 = scmp.ne.s32.totalorder %s87_s22, %s2094_s5  ;;  %p2100_p4 = scmp.lt.s32.totalorder %s2094_s5, %s2094_s5 }
  0x4b   :  { %p2101_p5 = por %p2100_p4, %p2099_p3 }
  0x4d   :  { %p2102_p6 = pnand %p2101_p5, %p2095_p2 }
  0x4f   :  { %2105 = shalt.err (!%p2102_p6)
}
  0x50   :  { %92 = dma.hbm_to_vmem [thread:$0]  %s2690_s7, 1024, %s87_s22, [#allocation9], %s2179_s24, %s2179_s24, %s2180_s25  }
  0x51   :  { %s2189_s29 = smov [#allocation13]   ;;  %s2190_s30 = smov [#allocation16]  }
  0x52   :  { %s114_s9 = sshll.u32 %s2189_s29, 4  ;;  %s140_s3 = sshll.u32 %s2190_s30, 4  ;;  %s115_s9 = int_to_ptr.vmem [resolvable:$true] %s114_s9  ;;  %s141_s3 = int_to_ptr.vmem [resolvable:$true] %s140_s3 }
  0x53   :  { %s2114_s0 = scalar_lea.vmem %s115_s9, 1024  ;;  %p2119_p8 = scmp.lt.s32.totalorder %s115_s9, %s115_s9 }
  0x54   :  { %p2115_p7 = scmp.ne.s32.totalorder %s115_s9, %s2114_s0  ;;  %p2120_p9 = scmp.lt.s32.totalorder %s2114_s0, %s2114_s0 }
  0x56   :  { %p2121_p10 = por %p2120_p9, %p2119_p8 }
  0x58   :  { %p2122_p11 = pnand %p2121_p10, %p2115_p7 }
  0x5a   :  { %2125 = shalt.err (!%p2122_p11)
}
  0x5b   :  { %120 = dma.hbm_to_vmem [thread:$0]  %s2694_s11, 1024, %s115_s9, [#allocation12], %s2179_s24, %s2179_s24, %s2180_s25  }
  0x5c   :  { %s2134_s7 = scalar_lea.vmem %s141_s3, 1024  ;;  %p2139_p13 = scmp.lt.s32.totalorder %s141_s3, %s141_s3 }
  0x5d   :  { %p2135_p12 = scmp.ne.s32.totalorder %s141_s3, %s2134_s7  ;;  %p2140_p0 = scmp.lt.s32.totalorder %s2134_s7, %s2134_s7 }
  0x5f   :  { %p2141_p1 = por %p2140_p0, %p2139_p13 }
  0x61   :  { %p2142_p2 = pnand %p2141_p1, %p2135_p12 }
  0x63   :  { %2145 = shalt.err (!%p2142_p2)
}
  0x64   :  { %146 = dma.hbm_to_vmem [thread:$0]  %s2697_s14, 1024, %s141_s3, [#allocation15], %s2179_s24, %s2179_s24, %s2180_s25  }
  0x65   :  { %2166 = dma.done.wait [#allocation3], 768  }
  0x66   :  { %2167 = vsyncadd [#allocation3], 4294966528 }
  0x67   :  { %2168 = dma.done.wait [#allocation6], 2048  }
  0x68   :  { %2169 = vsyncadd [#allocation6], 4294965248 }
  0x69   :  { %2170 = dma.done.wait [#allocation9], 2048  }
  0x6a   :  { %2171 = vsyncadd [#allocation9], 4294965248 }
  0x6b   :  { %2172 = dma.done.wait [#allocation12], 2048  }
  0x6c   :  { %2173 = vsyncadd [#allocation12], 4294965248 }
  0x6d   :  { %2174 = dma.done.wait [#allocation15], 2048  }
  0x6e   :  { %2175 = vsyncadd [#allocation15], 4294965248  ;;  %v189_v0 = vlaneseq  ;;  %v2191_v1 = vmov 0.0   ;;  %v2337_v3 = vld [vmem:[#allocation2] sm:$0xff]  ;;  %v2339_v4 = vld [vmem:[#allocation2 + $0x28] sm:$0xff]  ;;  %s2192_s11 = smov 32  }
  0x6f   :  { %1677 = vmatprep.subr.bf16.mxu0 %v2191_v1  ;;  %1705 = vmatprep.subr.bf16.mxu1 %v2191_v1  ;;  %v2342_v5 = vld [vmem:[#allocation2 + $0x8] sm:$0xff]  ;;  %v198_v6 = vrot.slane %v2337_v3, 7  ;;  %v203_v7 = vrot.slane %v2339_v4, 7  ;;  %v2350_v9 = vld [vmem:[#allocation2 + $0x10] sm:$0xff]  ;;  %v247_v14 = vrot.slane %v2337_v3, 1  ;;  %v2361_v15 = vld [vmem:[#allocation2 + $0x18] sm:$0xff] }
  0x70   :  { %v2335_v2 = vshrl.u32 %v189_v0, 7  ;;  %229 = vrot.lane.b32.xlu1 %v2337_v3, %s2192_s11  ;;  %v199_v8 = vrot.slane %v2342_v5, 7  ;;  %v248_v10 = vrot.slane %v2342_v5, 1  ;;  %v249_v11 = vrot.slane %v2350_v9, 1  ;;  %v1896_v12 = vld [vmem:[#allocation5 + $0x38] sm:$0xff]   ;;  %s2193_s14 = smov 16  }
  0x71   :  { %v279_v16 = vrot.slane %v2342_v5, 2  ;;  %v2365_v17 = vld [vmem:[#allocation2 + $0x20] sm:$0xff]  ;;  %1678 = vmatpush3.bf16.msra.mxu0 %v1896_v12  ;;  %v280_v19 = vrot.slane %v2350_v9, 2  ;;  %v278_v20 = vrot.slane %v2337_v3, 2  ;;  %v200_v22 = vrot.slane %v2350_v9, 7  ;;  %s2194_s25 = smov 48  }
  0x72   :  { %vm204_vm0 = vcmp.lt.s32.totalorder %v2335_v2, 1  ;;  %vm191_vm1 = vcmp.lt.s32.totalorder %v2335_v2, 2  ;;  %vm284_vm2 = vcmp.lt.s32.totalorder %v2335_v2, 6  ;;  %vm253_vm3 = vcmp.lt.s32.totalorder %v2335_v2, 7  ;;  %1679 = vmatprep.subr.bf16.mxu0 %v2191_v1  ;;  %v1897_v25 = vld [vmem:[#allocation5 + $0x30] sm:$0xff]   ;;  %v1898_v33 = vld [vmem:[#allocation5 + $0x28] sm:$0xff]  }
  0x73   :  { %v210_v13 = vsel %vm204_vm0, %v203_v7, %v198_v6  ;;  %v209_v18 = vsel %vm204_vm0, %v198_v6, %v199_v8  ;;  %v257_v21 = vsel %vm253_vm3, %v248_v10, %v249_v11  ;;  %v201_v23 = vrot.slane %v2361_v15, 7  ;;  %v1899_v40 = vld [vmem:[#allocation5 + $0x20] sm:$0xff]   ;;  %v1900_v47 = vld [vmem:[#allocation5 + $0x18] sm:$0xff]   ;;  %v1901_v49 = vld [vmem:[#allocation5 + $0x10] sm:$0xff]  }
  0x74   :  { %211 = vrot.lane.b32.xlu0 %v210_v13, %s2193_s14  ;;  %231 = vrot.lane.b32.xlu1 %v2342_v5, %s2192_s11  ;;  %v250_v24 = vrot.slane %v2361_v15, 1  ;;  %v251_v26 = vrot.slane %v2365_v17, 1  ;;  %v281_v27 = vrot.slane %v2361_v15, 2  ;;  %v282_v28 = vrot.slane %v2365_v17, 2  ;;  %v1902_v54 = vld [vmem:[#allocation5 + $0x8] sm:$0xff]   ;;  %v1903_v57 = vld [vmem:[#allocation5] sm:$0xff]  }
  0x75   :  { %v202_v29 = vrot.slane %v2365_v17, 7  ;;  %v258_v30 = vsel %vm253_vm3, %v247_v14, %v248_v10  ;;  %v288_v31 = vsel %vm284_vm2, %v279_v16, %v280_v19  ;;  %v252_v32 = vrot.slane %v2339_v4, 1  ;;  %1680 = vmatpush3.bf16.msra.mxu0 %v1897_v25 }
  0x76   :  { %v283_v34 = vrot.slane %v2339_v4, 2  ;;  %v188_v35 = vrot.slane %v2339_v4, 6  ;;  %v183_v36 = vrot.slane %v2337_v3, 6  ;;  %v184_v37 = vrot.slane %v2342_v5, 6  ;;  %1681 = vmatprep.subr.bf16.mxu0 %v2191_v1 }
  0x77   :  { %v185_v38 = vrot.slane %v2350_v9, 6  ;;  %v186_v39 = vrot.slane %v2361_v15, 6  ;;  %v289_v43 = vsel %vm284_vm2, %v278_v20, %v279_v16  ;;  %vm2195_vm4 = vmmov 0  }
  0x78   :  { %213 = vrot.lane.b32.xlu0 %v209_v18, %s2193_s14  ;;  %262 = vrot.lane.b32.xlu1 %v257_v21, %s2194_s25  ;;  %v197_v41 = vsel %vm191_vm1, %v188_v35, %v183_v36  ;;  %v196_v42 = vsel %vm191_vm1, %v183_v36, %v184_v37  ;;  %v207_v46 = vsel %vm204_vm0, %v200_v22, %v201_v23  ;;  %v187_v50 = vrot.slane %v2365_v17, 6 }
  0x79   :  { %v2415_v44 = vsel %vm191_vm1, %v185_v38, %v186_v39  ;;  %1693 = vmatprep.mubr.msk.bf16.mxu0 %vm2195_vm4, %v2191_v1  ;;  %v2421_v45 = vsel %vm191_vm1, %v184_v37, %v185_v38  ;;  %1682 = vmatpush3.bf16.msra.mxu0 %v1898_v33  ;;  %v208_v48 = vsel %vm204_vm0, %v199_v8, %v200_v22  ;;  %vm1054_vm5 = vcmask 1043456  }
  0x7a   :  { %1721 = vmatprep.mubr.msk.bf16.mxu1 %vm2195_vm4, %v2191_v1  ;;  %1683 = vmatprep.subr.bf16.mxu0 %v2191_v1  ;;  %v255_v51 = vsel %vm253_vm3, %v250_v24, %v251_v26  ;;  %v2445_v52 = vsel %vm191_vm1, %v187_v50, %v188_v35  ;;  %v2449_v53 = vsel %vm191_vm1, %v186_v39, %v187_v50  ;;  %vm1188_vm6 = vcmask 1041409  }
  0x7b   :  { %v256_v55 = vsel %vm253_vm3, %v249_v11, %v250_v24  ;;  %v286_v56 = vsel %vm284_vm2, %v281_v27, %v282_v28  ;;  %v287_v58 = vsel %vm284_vm2, %v280_v19, %v281_v27  ;;  %v205_v59 = vsel %vm204_vm0, %v202_v29, %v203_v7 }
  0x7c   :  { %260 = vrot.lane.b32.xlu0 %v258_v30, %s2194_s25  ;;  %293 = vrot.lane.b32.xlu1 %v288_v31, %s2179_s24  ;;  %v206_v60 = vsel %vm204_vm0, %v201_v23, %v202_v29  ;;  %v259_v61 = vsel %vm253_vm3, %v252_v32, %v247_v14  ;;  %v254_v62 = vsel %vm253_vm3, %v251_v26, %v252_v32  ;;  %vm1497_vm11 = vcmask 1041408  }
  0x7d   :  { %1684 = vmatpush3.bf16.msra.mxu0 %v1899_v40  ;;  %v290_v63 = vsel %vm284_vm2, %v283_v34, %v278_v20  ;;  %v285_v0 = vsel %vm284_vm2, %v282_v28, %v283_v34 }
  0x7e   :  { %1685 = vmatprep.subr.bf16.mxu0 %v2191_v1 }
  0x80   :  { %291 = vrot.lane.b32.xlu0 %v289_v43, %s2179_s24  ;;  %217 = vrot.lane.b32.xlu1 %v207_v46, %s2193_s14 }
  0x81   :  { %1686 = vmatpush3.bf16.msra.mxu0 %v1900_v47 }
  0x82   :  { %1687 = vmatprep.subr.bf16.mxu0 %v2191_v1 }
  0x84   :  { %215 = vrot.lane.b32.xlu0 %v208_v48, %s2193_s14  ;;  %235 = vrot.lane.b32.xlu1 %v2361_v15, %s2192_s11 }
  0x85   :  { %1688 = vmatpush3.bf16.msra.mxu0 %v1901_v49 }
  0x86   :  { %1689 = vmatprep.subr.bf16.mxu0 %v2191_v1 }
  0x88   :  { %233 = vrot.lane.b32.xlu0 %v2350_v9, %s2192_s11  ;;  %266 = vrot.lane.b32.xlu1 %v255_v51, %s2194_s25 }
  0x89   :  { %1690 = vmatpush3.bf16.msra.mxu0 %v1902_v54 }
  0x8a   :  { %1691 = vmatprep.subr.bf16.mxu0 %v2191_v1 }
  0x8c   :  { %264 = vrot.lane.b32.xlu0 %v256_v55, %s2194_s25  ;;  %297 = vrot.lane.b32.xlu1 %v286_v56, %s2179_s24  ;;  %v1904_v56 = vld [vmem:[#allocation7 + $0x38] sm:$0xff]  }
  0x8d   :  { %1692 = vmatpush3.bf16.msra.mxu0 %v1903_v57  ;;  %1706 = vmatpush3.bf16.msra.mxu1 %v1904_v56  ;;  %v1907_v57 = vld [vmem:[#allocation7 + $0x20] sm:$0xff]  }
  0x8e   :  { %1733 = vmatprep.subr.bf16.mxu0 %v2191_v1  ;;  %1707 = vmatprep.subr.bf16.mxu1 %v2191_v1 }
  0x90   :  { %295 = vrot.lane.b32.xlu0 %v287_v58, %s2179_s24  ;;  %221 = vrot.lane.b32.xlu1 %v205_v59, %s2193_s14  ;;  %v1524_v58 = vld [vmem:[%s2685_s2] ss:$0 sm:$0xff]  ;;  %v1908_v59 = vld [vmem:[#allocation7 + $0x18] sm:$0xff]  }
  0x94   :  { %219 = vrot.lane.b32.xlu0 %v206_v60, %s2193_s14  ;;  %239 = vrot.lane.b32.xlu1 %v2339_v4, %s2192_s11 }
  0x98   :  { %237 = vrot.lane.b32.xlu0 %v2365_v17, %s2192_s11  ;;  %270 = vrot.lane.b32.xlu1 %v259_v61, %s2194_s25  ;;  %v1909_v61 = vld [vmem:[#allocation7 + $0x10] sm:$0xff]  }
  0x9c   :  { %268 = vrot.lane.b32.xlu0 %v254_v62, %s2194_s25  ;;  %301 = vrot.lane.b32.xlu1 %v290_v63, %s2179_s24 }
  0xa0   :  { %299 = vrot.lane.b32.xlu0 %v285_v0, %s2179_s24 }
  0xe2   :  { %v230_v5 = vpop.permute.xlu1 %229 }
  0xe6   :  { %v212_v3 = vpop.permute.xlu0 %211  ;;  %v232_v6 = vpop.permute.xlu1 %231 }
  0xe7   :  { %v223_v8 = vadd.f32 %v212_v3, %v197_v41 }
  0xe9   :  { %v241_v14 = vadd.f32 %v230_v5, %v223_v8 }
  0xea   :  { %v214_v7 = vpop.permute.xlu0 %213  ;;  %v263_v10 = vpop.permute.xlu1 %262 }
  0xeb   :  { %v224_v9 = vadd.f32 %v214_v7, %v196_v42  ;;  %v1910_v7 = vld [vmem:[#allocation7 + $0x8] sm:$0xff]  }
  0xed   :  { %v242_v11 = vadd.f32 %v232_v6, %v224_v9 }
  0xee   :  { %v261_v12 = vpop.permute.xlu0 %260  ;;  %v294_v15 = vpop.permute.xlu1 %293 }
  0xef   :  { %v273_v13 = vadd.f32 %v263_v10, %v242_v11  ;;  %v272_v4 = vadd.f32 %v261_v12, %v241_v14 }
  0xf1   :  { %v304_v17 = vadd.f32 %v294_v15, %v273_v13  ;;  %v1911_v13 = vld [vmem:[#allocation7] sm:$0xff]  }
  0xf2   :  { %v292_v16 = vpop.permute.xlu0 %291  ;;  %v218_v19 = vpop.permute.xlu1 %217 }
  0xf3   :  { %v303_v18 = vadd.f32 %v292_v16, %v272_v4  ;;  %v226_v23 = vadd.f32 %v218_v19, %v2415_v44 }
  0xf5   :  { %v309_v20 = vpack.c.bf16 %v304_v17, %v303_v18 }
  0xf6   :  { %v216_v21 = vpop.permute.xlu0 %215  ;;  %v236_v22 = vpop.permute.xlu1 %235 }
  0xf7   :  { %1694 = vmatmul.mubr.bf16.vlgmr.msra.gmra.mxu0 %v309_v20  ;;  %v225_v26 = vadd.f32 %v216_v21, %v2421_v45  ;;  %v244_v27 = vadd.f32 %v236_v22, %v226_v23 }
  0xf8   :  { %1697 = vmatprep.mubr.msk.bf16.mxu0 %vm2195_vm4, %v2191_v1 }
  0xfa   :  { %v234_v24 = vpop.permute.xlu0 %233  ;;  %v267_v25 = vpop.permute.xlu1 %266 }
  0xfb   :  { %v243_v29 = vadd.f32 %v234_v24, %v225_v26  ;;  %v275_v31 = vadd.f32 %v267_v25, %v244_v27 }
  0xfe   :  { %v265_v28 = vpop.permute.xlu0 %264  ;;  %v298_v30 = vpop.permute.xlu1 %297 }
  0xff   :  { %v274_v32 = vadd.f32 %v265_v28, %v243_v29  ;;  %v306_v34 = vadd.f32 %v298_v30, %v275_v31 }
 0x102   :  { %v296_v33 = vpop.permute.xlu0 %295  ;;  %v222_v36 = vpop.permute.xlu1 %221 }
 0x103   :  { %v305_v35 = vadd.f32 %v296_v33, %v274_v32  ;;  %v228_v40 = vadd.f32 %v222_v36, %v2445_v52  ;;  %v1905_v52 = vld [vmem:[#allocation7 + $0x30] sm:$0xff]  }
 0x104   :  { %1708 = vmatpush3.bf16.msra.mxu1 %v1905_v52 }
 0x105   :  { %v310_v37 = vpack.c.bf16 %v306_v34, %v305_v35  ;;  %1709 = vmatprep.subr.bf16.mxu1 %v2191_v1 }
 0x106   :  { %v220_v38 = vpop.permute.xlu0 %219  ;;  %v240_v39 = vpop.permute.xlu1 %239 }
 0x107   :  { %1698 = vmatmul.mubr.bf16.gmra.mxu0 %v310_v37  ;;  %v227_v43 = vadd.f32 %v220_v38, %v2449_v53  ;;  %v246_v44 = vadd.f32 %v240_v39, %v228_v40  ;;  %v1906_v53 = vld [vmem:[#allocation7 + $0x28] sm:$0xff]  }
 0x108   :  { %1701 = vmatprep.mubr.msk.bf16.mxu0 %vm2195_vm4, %v2191_v1  ;;  %1710 = vmatpush3.bf16.msra.mxu1 %v1906_v53 }
 0x109   :  { %1711 = vmatprep.subr.bf16.mxu1 %v2191_v1 }
 0x10a   :  { %v238_v41 = vpop.permute.xlu0 %237  ;;  %v271_v42 = vpop.permute.xlu1 %270 }
 0x10b   :  { %v245_v46 = vadd.f32 %v238_v41, %v227_v43  ;;  %v277_v48 = vadd.f32 %v271_v42, %v246_v44  ;;  %v1912_v43 = vld [vmem:[#allocation8 + $0x38] sm:$0xff]  }
 0x10c   :  { %1712 = vmatpush3.bf16.msra.mxu1 %v1907_v57  ;;  %1734 = vmatpush3.bf16.msra.mxu0 %v1912_v43 }
 0x10d   :  { %1713 = vmatprep.subr.bf16.mxu1 %v2191_v1  ;;  %1735 = vmatprep.subr.bf16.mxu0 %v2191_v1 }
 0x10e   :  { %v269_v45 = vpop.permute.xlu0 %268  ;;  %v302_v47 = vpop.permute.xlu1 %301 }
 0x10f   :  { %v276_v49 = vadd.f32 %v269_v45, %v245_v46  ;;  %v308_v51 = vadd.f32 %v302_v47, %v277_v48  ;;  %v1913_v46 = vld [vmem:[#allocation8 + $0x30] sm:$0xff]  }
 0x110   :  { %1714 = vmatpush3.bf16.msra.mxu1 %v1908_v59  ;;  %1736 = vmatpush3.bf16.msra.mxu0 %v1913_v46 }
 0x111   :  { %1715 = vmatprep.subr.bf16.mxu1 %v2191_v1  ;;  %1737 = vmatprep.subr.bf16.mxu0 %v2191_v1 }
 0x112   :  { %v300_v50 = vpop.permute.xlu0 %299 }
 0x113   :  { %v307_v54 = vadd.f32 %v300_v50, %v276_v49  ;;  %v1914_v50 = vld [vmem:[#allocation8 + $0x28] sm:$0xff]  }
 0x114   :  { %1716 = vmatpush3.bf16.msra.mxu1 %v1909_v61  ;;  %1738 = vmatpush3.bf16.msra.mxu0 %v1914_v50 }
 0x115   :  { %v311_v55 = vpack.c.bf16 %v308_v51, %v307_v54  ;;  %1717 = vmatprep.subr.bf16.mxu1 %v2191_v1  ;;  %v1915_v54 = vld [vmem:[#allocation8 + $0x20] sm:$0xff]   ;;  %1739 = vmatprep.subr.bf16.mxu0 %v2191_v1 }
 0x117   :  { %1702 = vmatmul.mubr.bf16.gmra.mxu0 %v311_v55  ;;  %v1916_v55 = vld [vmem:[#allocation8 + $0x18] sm:$0xff]  }
 0x118   :  { %1749 = vmatprep.mubr.msk.bf16.mxu0 %vm2195_vm4, %v2191_v1  ;;  %1718 = vmatpush3.bf16.msra.mxu1 %v1910_v7 }
 0x119   :  { %1719 = vmatprep.subr.bf16.mxu1 %v2191_v1  ;;  %1740 = vmatpush3.bf16.msra.mxu0 %v1915_v54 }
 0x11a   :  { %1741 = vmatprep.subr.bf16.mxu0 %v2191_v1 }
 0x11c   :  { %1720 = vmatpush3.bf16.msra.mxu1 %v1911_v13 }
 0x11d   :  { %1761 = vmatprep.subr.bf16.mxu1 %v2191_v1  ;;  %1742 = vmatpush3.bf16.msra.mxu0 %v1916_v55 }
 0x11e   :  { %1743 = vmatprep.subr.bf16.mxu0 %v2191_v1 }
 0x1b7   :  { %v417_v60 = vpop.f32.mrf.mxu0 }
 0x1b8   :  { %v418_v62 = vadd.f32 %v1524_v58, %v417_v60 }
 0x1b9   :  { %v1695_v63 = vpop.f32.mrf.mxu0 }
 0x1ba   :  { %v2533_v0 = vmax.f32 %v418_v62, 0.0 }
 0x1bb   :  { %v420_v5 = vpop.f32.mrf.mxu0 }
 0x1bc   :  { %v421_v3 = vadd.f32 %v1524_v58, %v420_v5  ;;  %458 = vrot.lane.b32.xlu0 %v2533_v0, %s2192_s11  ;;  %v446_v9 = vrot.slane %v2533_v0, 6  ;;  %v476_v11 = vrot.slane %v2533_v0, 2 }
 0x1bd   :  { %v1696_v6 = vpop.f32.mrf.mxu0 }
 0x1be   :  { %v441_v8 = vmax.f32 %v421_v3, 0.0 }
 0x1c0   :  { %v447_v10 = vrot.slane %v441_v8, 6  ;;  %460 = vrot.lane.b32.xlu1 %v441_v8, %s2192_s11  ;;  %v477_v12 = vrot.slane %v441_v8, 2 }
 0x1c2   :  { %v486_v14 = vsel %vm284_vm2, %v476_v11, %v477_v12  ;;  %v2546_v15 = vsel %vm191_vm1, %v446_v9, %v447_v10 }
 0x1c3   :  { %488 = vrot.lane.b32.xlu0 %v486_v14, %s2179_s24 }
 0x1c7   :  { %v425_v4 = vpop.f32.mrf.mxu0 }
 0x1c8   :  { %v426_v16 = vadd.f32 %v1524_v58, %v425_v4 }
 0x1c9   :  { %v1699_v17 = vpop.f32.mrf.mxu0 }
 0x1ca   :  { %v442_v18 = vmax.f32 %v426_v16, 0.0 }
 0x1cb   :  { %v428_v19 = vpop.f32.mrf.mxu0 }
 0x1cc   :  { %v448_v20 = vrot.slane %v442_v18, 6  ;;  %v429_v21 = vadd.f32 %v1524_v58, %v428_v19  ;;  %462 = vrot.lane.b32.xlu0 %v442_v18, %s2192_s11  ;;  %v478_v22 = vrot.slane %v442_v18, 2  ;;  %v1917_v18 = vld [vmem:[#allocation8 + $0x10] sm:$0xff]   ;;  %v1918_v19 = vld [vmem:[#allocation8 + $0x8] sm:$0xff]  }
 0x1cd   :  { %v1700_v23 = vpop.f32.mrf.mxu0  ;;  %1744 = vmatpush3.bf16.msra.mxu0 %v1917_v18 }
 0x1ce   :  { %v443_v24 = vmax.f32 %v429_v21, 0.0  ;;  %v485_v25 = vsel %vm284_vm2, %v477_v12, %v478_v22  ;;  %v455_v26 = vsel %vm191_vm1, %v447_v10, %v448_v20  ;;  %1745 = vmatprep.subr.bf16.mxu0 %v2191_v1  ;;  %v1920_v21 = vld [vmem:[#allocation10 + $0x38] sm:$0xff]   ;;  %v1922_v23 = vld [vmem:[#allocation10 + $0x28] sm:$0xff]  }
 0x1cf   :  { %490 = vrot.lane.b32.xlu1 %v485_v25, %s2179_s24  ;;  %v1924_v25 = vld [vmem:[#allocation10 + $0x18] sm:$0xff]  }
 0x1d0   :  { %v449_v27 = vrot.slane %v443_v24, 6  ;;  %v479_v28 = vrot.slane %v443_v24, 2 }
 0x1d1   :  { %1746 = vmatpush3.bf16.msra.mxu0 %v1918_v19 }
 0x1d2   :  { %v484_v29 = vsel %vm284_vm2, %v478_v22, %v479_v28  ;;  %v454_v30 = vsel %vm191_vm1, %v448_v20, %v449_v27  ;;  %1747 = vmatprep.subr.bf16.mxu0 %v2191_v1  ;;  %v1919_v20 = vld [vmem:[#allocation8] sm:$0xff]   ;;  %v1921_v22 = vld [vmem:[#allocation10 + $0x30] sm:$0xff]  }
 0x1d3   :  { %464 = vrot.lane.b32.xlu1 %v443_v24, %s2192_s11  ;;  %492 = vrot.lane.b32.xlu0 %v484_v29, %s2179_s24  ;;  %v1923_v24 = vld [vmem:[#allocation10 + $0x20] sm:$0xff]  }
 0x1d5   :  { %1748 = vmatpush3.bf16.msra.mxu0 %v1919_v20 }
 0x1d6   :  { %1789 = vmatprep.subr.bf16.mxu0 %v2191_v1 }
 0x1d7   :  { %v433_v31 = vpop.f32.mrf.mxu0 }
 0x1d8   :  { %v434_v32 = vadd.f32 %v1524_v58, %v433_v31 }
 0x1d9   :  { %v1703_v33 = vpop.f32.mrf.mxu0 }
 0x1da   :  { %v444_v34 = vmax.f32 %v434_v32, 0.0 }
 0x1db   :  { %v436_v35 = vpop.f32.mrf.mxu0 }
 0x1dc   :  { %v450_v36 = vrot.slane %v444_v34, 6  ;;  %v437_v37 = vadd.f32 %v1524_v58, %v436_v35  ;;  %466 = vrot.lane.b32.xlu0 %v444_v34, %s2192_s11  ;;  %v480_v38 = vrot.slane %v444_v34, 2 }
 0x1dd   :  { %v1704_v39 = vpop.f32.mrf.mxu0 }
 0x1de   :  { %v445_v40 = vmax.f32 %v437_v37, 0.0  ;;  %v483_v41 = vsel %vm284_vm2, %v479_v28, %v480_v38  ;;  %v453_v42 = vsel %vm191_vm1, %v449_v27, %v450_v36 }
 0x1df   :  { %494 = vrot.lane.b32.xlu1 %v483_v41, %s2179_s24 }
 0x1e0   :  { %v451_v44 = vrot.slane %v445_v40, 6  ;;  %v481_v45 = vrot.slane %v445_v40, 2 }
 0x1e2   :  { %v482_v47 = vsel %vm284_vm2, %v480_v38, %v481_v45  ;;  %v457_v48 = vsel %vm191_vm1, %v451_v44, %v446_v9  ;;  %v452_v49 = vsel %vm191_vm1, %v450_v36, %v451_v44  ;;  %v487_v51 = vsel %vm284_vm2, %v481_v45, %v476_v11 }
 0x1e3   :  { %468 = vrot.lane.b32.xlu1 %v445_v40, %s2192_s11  ;;  %496 = vrot.lane.b32.xlu0 %v482_v47, %s2179_s24 }
 0x1e7   :  { %498 = vrot.lane.b32.xlu1 %v487_v51, %s2179_s24 }
 0x22e   :  { %v459_v56 = vpop.permute.xlu0 %458 }
 0x22f   :  { %v470_v57 = vadd.f32 %v459_v56, %v457_v48  ;;  %v1925_v56 = vld [vmem:[#allocation10 + $0x10] sm:$0xff]  }
 0x232   :  { %v461_v52 = vpop.permute.xlu1 %460 }
 0x233   :  { %v471_v2 = vadd.f32 %v461_v52, %v2546_v15  ;;  %v1926_v52 = vld [vmem:[#allocation10 + $0x8] sm:$0xff]  }
 0x235   :  { %v489_v53 = vpop.permute.xlu0 %488 }
 0x236   :  { %v500_v59 = vadd.f32 %v489_v53, %v470_v57  ;;  %v1927_v53 = vld [vmem:[#allocation10] sm:$0xff]   ;;  %v1928_v57 = vld [vmem:[#allocation11 + $0x38] sm:$0xff]  }
 0x23e   :  { %v463_v62 = vpop.permute.xlu0 %462 }
 0x23f   :  { %v472_v5 = vadd.f32 %v463_v62, %v455_v26  ;;  %v1533_v26 = vld [vmem:[%s2687_s4] ss:$0 sm:$0xff] }
 0x241   :  { %v491_v58 = vpop.permute.xlu1 %490 }
 0x242   :  { %v501_v60 = vadd.f32 %v491_v58, %v471_v2  ;;  %v1929_v2 = vld [vmem:[#allocation11 + $0x30] sm:$0xff]   ;;  %v1930_v58 = vld [vmem:[#allocation11 + $0x28] sm:$0xff]  }
 0x244   :  { %v506_v61 = vpack.c.bf16 %v501_v60, %v500_v59  ;;  %v1931_v59 = vld [vmem:[#allocation11 + $0x20] sm:$0xff]   ;;  %v1932_v60 = vld [vmem:[#allocation11 + $0x18] sm:$0xff]  }
 0x245   :  { %v465_v63 = vpop.permute.xlu1 %464  ;;  %v493_v0 = vpop.permute.xlu0 %492 }
 0x246   :  { %1722 = vmatmul.mubr.bf16.vlgmr.msra.gmra.mxu1 %v506_v61  ;;  %v473_v3 = vadd.f32 %v465_v63, %v454_v30  ;;  %v502_v7 = vadd.f32 %v493_v0, %v472_v5  ;;  %v1542_v61 = vld [vmem:[%s2689_s6] ss:$0 sm:$0xff] }
 0x247   :  { %1725 = vmatprep.mubr.msk.bf16.mxu1 %vm2195_vm4, %v2191_v1  ;;  %1762 = vmatpush3.bf16.msra.mxu1 %v1920_v21 }
 0x248   :  { %1763 = vmatprep.subr.bf16.mxu1 %v2191_v1 }
 0x24b   :  { %1764 = vmatpush3.bf16.msra.mxu1 %v1921_v22 }
 0x24c   :  { %1765 = vmatprep.subr.bf16.mxu1 %v2191_v1 }
 0x24e   :  { %v467_v9 = vpop.permute.xlu0 %466 }
 0x24f   :  { %v474_v13 = vadd.f32 %v467_v9, %v453_v42  ;;  %1766 = vmatpush3.bf16.msra.mxu1 %v1922_v23 }
 0x250   :  { %1767 = vmatprep.subr.bf16.mxu1 %v2191_v1 }
 0x251   :  { %v495_v6 = vpop.permute.xlu1 %494 }
 0x252   :  { %v503_v8 = vadd.f32 %v495_v6, %v473_v3 }
 0x253   :  { %1768 = vmatpush3.bf16.msra.mxu1 %v1923_v24 }
 0x254   :  { %v507_v10 = vpack.c.bf16 %v503_v8, %v502_v7  ;;  %1769 = vmatprep.subr.bf16.mxu1 %v2191_v1 }
 0x255   :  { %v469_v11 = vpop.permute.xlu1 %468  ;;  %v497_v12 = vpop.permute.xlu0 %496 }
 0x256   :  { %1726 = vmatmul.mubr.bf16.gmra.mxu1 %v507_v10  ;;  %v475_v14 = vadd.f32 %v469_v11, %v452_v49  ;;  %v504_v4 = vadd.f32 %v497_v12, %v474_v13 }
 0x257   :  { %1729 = vmatprep.mubr.msk.bf16.mxu1 %vm2195_vm4, %v2191_v1  ;;  %1770 = vmatpush3.bf16.msra.mxu1 %v1924_v25 }
 0x258   :  { %1771 = vmatprep.subr.bf16.mxu1 %v2191_v1 }
 0x259   :  { %v499_v15 = vpop.permute.xlu1 %498 }
 0x25a   :  { %v505_v16 = vadd.f32 %v499_v15, %v475_v14 }
 0x25b   :  { %1772 = vmatpush3.bf16.msra.mxu1 %v1925_v56 }
 0x25c   :  { %v508_v17 = vpack.c.bf16 %v505_v16, %v504_v4  ;;  %1773 = vmatprep.subr.bf16.mxu1 %v2191_v1 }
 0x25e   :  { %1730 = vmatmul.mubr.bf16.gmra.mxu1 %v508_v17 }
 0x25f   :  { %1777 = vmatprep.mubr.msk.bf16.mxu1 %vm2195_vm4, %v2191_v1  ;;  %1774 = vmatpush3.bf16.msra.mxu1 %v1926_v52 }
 0x260   :  { %1775 = vmatprep.subr.bf16.mxu1 %v2191_v1 }
 0x263   :  { %1776 = vmatpush3.bf16.msra.mxu1 %v1927_v53 }
 0x264   :  { %1817 = vmatprep.subr.bf16.mxu1 %v2191_v1 }
 0x306   :  { %v614_v27 = vpop.f32.mrf.mxu1 }
 0x307   :  { %v615_v29 = vadd.f32 %v1533_v26, %v614_v27  ;;  %v1933_v27 = vld [vmem:[#allocation11 + $0x10] sm:$0xff]  }
 0x308   :  { %v1723_v28 = vpop.f32.mrf.mxu1 }
 0x309   :  { %v637_v33 = vmax.f32 %v615_v29, 0.0  ;;  %v1934_v28 = vld [vmem:[#allocation11 + $0x8] sm:$0xff]   ;;  %v1935_v29 = vld [vmem:[#allocation11] sm:$0xff]  }
 0x30a   :  { %v617_v30 = vpop.f32.mrf.mxu1 }
 0x30b   :  { %v618_v31 = vadd.f32 %v1533_v26, %v617_v30  ;;  %v1551_v30 = vld [vmem:[%s2691_s8] ss:$0 sm:$0xff] }
 0x30c   :  { %v1724_v32 = vpop.f32.mrf.mxu1 }
 0x30d   :  { %v638_v34 = vmax.f32 %v618_v31, 0.0 }
 0x30f   :  { %v643_v35 = vpack.c.bf16 %v638_v34, %v637_v33 }
 0x311   :  { %1750 = vmatmul.mubr.bf16.vlgmr.msra.gmra.mxu0 %v643_v35 }
 0x312   :  { %1753 = vmatprep.mubr.msk.bf16.mxu0 %vm2195_vm4, %v2191_v1  ;;  %1790 = vmatpush3.bf16.msra.mxu0 %v1928_v57 }
 0x313   :  { %1791 = vmatprep.subr.bf16.mxu0 %v2191_v1 }
 0x316   :  { %v622_v36 = vpop.f32.mrf.mxu1  ;;  %1792 = vmatpush3.bf16.msra.mxu0 %v1929_v2  ;;  %v1936_v2 = vld [vmem:[#allocation13 + $0x38] sm:$0xff]  }
 0x317   :  { %v623_v38 = vadd.f32 %v1533_v26, %v622_v36  ;;  %1793 = vmatprep.subr.bf16.mxu0 %v2191_v1 }
 0x318   :  { %v1727_v37 = vpop.f32.mrf.mxu1 }
 0x319   :  { %v639_v42 = vmax.f32 %v623_v38, 0.0 }
 0x31a   :  { %v625_v39 = vpop.f32.mrf.mxu1  ;;  %1794 = vmatpush3.bf16.msra.mxu0 %v1930_v58  ;;  %v1937_v58 = vld [vmem:[#allocation13 + $0x30] sm:$0xff]  }
 0x31b   :  { %v626_v40 = vadd.f32 %v1533_v26, %v625_v39  ;;  %1795 = vmatprep.subr.bf16.mxu0 %v2191_v1 }
 0x31c   :  { %v1728_v41 = vpop.f32.mrf.mxu1 }
 0x31d   :  { %v640_v43 = vmax.f32 %v626_v40, 0.0 }
 0x31e   :  { %v630_v44 = vpop.f32.mrf.mxu1  ;;  %1796 = vmatpush3.bf16.msra.mxu0 %v1931_v59  ;;  %v1938_v59 = vld [vmem:[#allocation13 + $0x28] sm:$0xff]  }
 0x31f   :  { %v644_v45 = vpack.c.bf16 %v640_v43, %v639_v42  ;;  %v631_v47 = vadd.f32 %v1533_v26, %v630_v44  ;;  %1797 = vmatprep.subr.bf16.mxu0 %v2191_v1 }
 0x320   :  { %v1731_v46 = vpop.f32.mrf.mxu1 }
 0x321   :  { %1754 = vmatmul.mubr.bf16.gmra.mxu0 %v644_v45  ;;  %v641_v51 = vmax.f32 %v631_v47, 0.0 }
 0x322   :  { %v633_v48 = vpop.f32.mrf.mxu1  ;;  %1757 = vmatprep.mubr.msk.bf16.mxu0 %vm2195_vm4, %v2191_v1  ;;  %1798 = vmatpush3.bf16.msra.mxu0 %v1932_v60  ;;  %v1939_v60 = vld [vmem:[#allocation13 + $0x20] sm:$0xff]  }
 0x323   :  { %v634_v49 = vadd.f32 %v1533_v26, %v633_v48  ;;  %1799 = vmatprep.subr.bf16.mxu0 %v2191_v1 }
 0x324   :  { %v1732_v50 = vpop.f32.mrf.mxu1 }
 0x325   :  { %v642_v54 = vmax.f32 %v634_v49, 0.0 }
 0x326   :  { %1800 = vmatpush3.bf16.msra.mxu0 %v1933_v27 }
 0x327   :  { %v645_v55 = vpack.c.bf16 %v642_v54, %v641_v51  ;;  %1801 = vmatprep.subr.bf16.mxu0 %v2191_v1 }
 0x329   :  { %1758 = vmatmul.mubr.bf16.gmra.mxu0 %v645_v55 }
 0x32a   :  { %1805 = vmatprep.mubr.msk.bf16.mxu0 %vm2195_vm4, %v2191_v1  ;;  %1802 = vmatpush3.bf16.msra.mxu0 %v1934_v28 }
 0x32b   :  { %1803 = vmatprep.subr.bf16.mxu0 %v2191_v1 }
 0x32e   :  { %1804 = vmatpush3.bf16.msra.mxu0 %v1935_v29 }
 0x32f   :  { %1837 = vmatprep.subr.bf16.mxu0 %v2191_v1 }
 0x3d1   :  { %v751_v62 = vpop.f32.mrf.mxu0 }
 0x3d2   :  { %v752_v0 = vadd.f32 %v1542_v61, %v751_v62  ;;  %v1941_v62 = vld [vmem:[#allocation13 + $0x10] sm:$0xff]  }
 0x3d3   :  { %v1751_v63 = vpop.f32.mrf.mxu0 }
 0x3d4   :  { %v774_v7 = vmax.f32 %v752_v0, 0.0  ;;  %v1942_v63 = vld [vmem:[#allocation13 + $0x8] sm:$0xff]   ;;  %v1943_v0 = vld [vmem:[#allocation14 + $0x38] sm:$0xff]  }
 0x3d5   :  { %v754_v5 = vpop.f32.mrf.mxu0 }
 0x3d6   :  { %v755_v3 = vadd.f32 %v1542_v61, %v754_v5  ;;  %v1944_v5 = vld [vmem:[#allocation13] sm:$0xff]  }
 0x3d7   :  { %v1752_v6 = vpop.f32.mrf.mxu0 }
 0x3d8   :  { %v775_v8 = vmax.f32 %v755_v3, 0.0  ;;  %v1945_v3 = vld [vmem:[#allocation14 + $0x30] sm:$0xff]   ;;  %v1946_v6 = vld [vmem:[#allocation14 + $0x28] sm:$0xff]  }
 0x3da   :  { %v780_v9 = vpack.c.bf16 %v775_v8, %v774_v7  ;;  %v1947_v7 = vld [vmem:[#allocation14 + $0x20] sm:$0xff]   ;;  %v1948_v8 = vld [vmem:[#allocation14 + $0x18] sm:$0xff]  }
 0x3dc   :  { %1778 = vmatmul.mubr.bf16.vlgmr.msra.gmra.mxu1 %v780_v9  ;;  %v1949_v9 = vld [vmem:[#allocation14 + $0x10] sm:$0xff]  }
 0x3dd   :  { %1781 = vmatprep.mubr.msk.bf16.mxu1 %vm2195_vm4, %v2191_v1  ;;  %1818 = vmatpush3.bf16.msra.mxu1 %v1943_v0 }
 0x3de   :  { %1819 = vmatprep.subr.bf16.mxu1 %v2191_v1 }
 0x3e1   :  { %v759_v10 = vpop.f32.mrf.mxu0  ;;  %1820 = vmatpush3.bf16.msra.mxu1 %v1945_v3 }
 0x3e2   :  { %v760_v12 = vadd.f32 %v1542_v61, %v759_v10  ;;  %1821 = vmatprep.subr.bf16.mxu1 %v2191_v1  ;;  %v1950_v10 = vld [vmem:[#allocation14 + $0x8] sm:$0xff]  }
 0x3e3   :  { %v1755_v11 = vpop.f32.mrf.mxu0 }
 0x3e4   :  { %v776_v4 = vmax.f32 %v760_v12, 0.0  ;;  %v1951_v11 = vld [vmem:[#allocation14] sm:$0xff]  }
 0x3e5   :  { %v762_v13 = vpop.f32.mrf.mxu0  ;;  %1822 = vmatpush3.bf16.msra.mxu1 %v1946_v6 }
 0x3e6   :  { %v763_v14 = vadd.f32 %v1542_v61, %v762_v13  ;;  %1823 = vmatprep.subr.bf16.mxu1 %v2191_v1 }
 0x3e7   :  { %v1756_v15 = vpop.f32.mrf.mxu0 }
 0x3e8   :  { %v777_v16 = vmax.f32 %v763_v14, 0.0 }
 0x3e9   :  { %v767_v17 = vpop.f32.mrf.mxu0  ;;  %1824 = vmatpush3.bf16.msra.mxu1 %v1947_v7 }
 0x3ea   :  { %v781_v18 = vpack.c.bf16 %v777_v16, %v776_v4  ;;  %v768_v20 = vadd.f32 %v1542_v61, %v767_v17  ;;  %1825 = vmatprep.subr.bf16.mxu1 %v2191_v1  ;;  %v1560_v4 = vld [vmem:[%s2693_s10] ss:$0 sm:$0xff] }
 0x3eb   :  { %v1759_v19 = vpop.f32.mrf.mxu0 }
 0x3ec   :  { %1782 = vmatmul.mubr.bf16.gmra.mxu1 %v781_v18  ;;  %v778_v24 = vmax.f32 %v768_v20, 0.0 }
 0x3ed   :  { %v770_v21 = vpop.f32.mrf.mxu0  ;;  %1785 = vmatprep.mubr.msk.bf16.mxu1 %vm2195_vm4, %v2191_v1  ;;  %1826 = vmatpush3.bf16.msra.mxu1 %v1948_v8 }
 0x3ee   :  { %v771_v22 = vadd.f32 %v1542_v61, %v770_v21  ;;  %v1940_v61 = vld [vmem:[#allocation13 + $0x18] sm:$0xff]   ;;  %1827 = vmatprep.subr.bf16.mxu1 %v2191_v1 }
 0x3ef   :  { %v1760_v23 = vpop.f32.mrf.mxu0 }
 0x3f0   :  { %v779_v25 = vmax.f32 %v771_v22, 0.0 }
 0x3f1   :  { %1828 = vmatpush3.bf16.msra.mxu1 %v1949_v9 }
 0x3f2   :  { %v782_v26 = vpack.c.bf16 %v779_v25, %v778_v24  ;;  %1829 = vmatprep.subr.bf16.mxu1 %v2191_v1 }
 0x3f4   :  { %1786 = vmatmul.mubr.bf16.gmra.mxu1 %v782_v26 }
 0x3f5   :  { %1833 = vmatprep.mubr.msk.bf16.mxu1 %vm2195_vm4, %v2191_v1  ;;  %1830 = vmatpush3.bf16.msra.mxu1 %v1950_v10 }
 0x3f6   :  { %1831 = vmatprep.subr.bf16.mxu1 %v2191_v1 }
 0x3f9   :  { %1832 = vmatpush3.bf16.msra.mxu1 %v1951_v11 }
 0x3fa   :  { %1857 = vmatprep.subr.bf16.mxu1 %v2191_v1 }
 0x49c   :  { %v888_v31 = vpop.f32.mrf.mxu1 }
 0x49d   :  { %v889_v33 = vadd.f32 %v1551_v30, %v888_v31 }
 0x49e   :  { %v1779_v32 = vpop.f32.mrf.mxu1 }
 0x49f   :  { %v911_v37 = vmax.f32 %v889_v33, 0.0 }
 0x4a0   :  { %v891_v34 = vpop.f32.mrf.mxu1 }
 0x4a1   :  { %v892_v35 = vadd.f32 %v1551_v30, %v891_v34 }
 0x4a2   :  { %v1780_v36 = vpop.f32.mrf.mxu1 }
 0x4a3   :  { %v912_v38 = vmax.f32 %v892_v35, 0.0 }
 0x4a5   :  { %v917_v39 = vpack.c.bf16 %v912_v38, %v911_v37 }
 0x4a7   :  { %1806 = vmatmul.mubr.bf16.vlgmr.msra.gmra.mxu0 %v917_v39 }
 0x4a8   :  { %1809 = vmatprep.mubr.msk.bf16.mxu0 %vm2195_vm4, %v2191_v1  ;;  %1838 = vmatpush3.bf16.msra.mxu0 %v1936_v2 }
 0x4a9   :  { %1839 = vmatprep.subr.bf16.mxu0 %v2191_v1 }
 0x4ac   :  { %v896_v40 = vpop.f32.mrf.mxu1  ;;  %1840 = vmatpush3.bf16.msra.mxu0 %v1937_v58 }
 0x4ad   :  { %v897_v42 = vadd.f32 %v1551_v30, %v896_v40  ;;  %1841 = vmatprep.subr.bf16.mxu0 %v2191_v1 }
 0x4ae   :  { %v1783_v41 = vpop.f32.mrf.mxu1 }
 0x4af   :  { %v913_v46 = vmax.f32 %v897_v42, 0.0 }
 0x4b0   :  { %v899_v43 = vpop.f32.mrf.mxu1  ;;  %1842 = vmatpush3.bf16.msra.mxu0 %v1938_v59 }
 0x4b1   :  { %v900_v44 = vadd.f32 %v1551_v30, %v899_v43  ;;  %1843 = vmatprep.subr.bf16.mxu0 %v2191_v1 }
 0x4b2   :  { %v1784_v45 = vpop.f32.mrf.mxu1 }
 0x4b3   :  { %v914_v47 = vmax.f32 %v900_v44, 0.0 }
 0x4b4   :  { %v904_v48 = vpop.f32.mrf.mxu1  ;;  %1844 = vmatpush3.bf16.msra.mxu0 %v1939_v60 }
 0x4b5   :  { %v918_v49 = vpack.c.bf16 %v914_v47, %v913_v46  ;;  %v905_v51 = vadd.f32 %v1551_v30, %v904_v48  ;;  %1845 = vmatprep.subr.bf16.mxu0 %v2191_v1 }
 0x4b6   :  { %v1787_v50 = vpop.f32.mrf.mxu1 }
 0x4b7   :  { %1810 = vmatmul.mubr.bf16.gmra.mxu0 %v918_v49  ;;  %v915_v52 = vmax.f32 %v905_v51, 0.0 }
 0x4b8   :  { %v907_v54 = vpop.f32.mrf.mxu1  ;;  %1813 = vmatprep.mubr.msk.bf16.mxu0 %vm2195_vm4, %v2191_v1  ;;  %1846 = vmatpush3.bf16.msra.mxu0 %v1940_v61 }
 0x4b9   :  { %v908_v55 = vadd.f32 %v1551_v30, %v907_v54  ;;  %1847 = vmatprep.subr.bf16.mxu0 %v2191_v1 }
 0x4ba   :  { %v1788_v56 = vpop.f32.mrf.mxu1 }
 0x4bb   :  { %v916_v53 = vmax.f32 %v908_v55, 0.0 }
 0x4bc   :  { %1848 = vmatpush3.bf16.msra.mxu0 %v1941_v62 }
 0x4bd   :  { %v919_v57 = vpack.c.bf16 %v916_v53, %v915_v52  ;;  %1849 = vmatprep.subr.bf16.mxu0 %v2191_v1 }
 0x4bf   :  { %1814 = vmatmul.mubr.bf16.gmra.mxu0 %v919_v57 }
 0x4c0   :  { %1853 = vmatprep.mubr.msk.bf16.mxu0 %vm2195_vm4, %v2191_v1  ;;  %1850 = vmatpush3.bf16.msra.mxu0 %v1942_v63 }
 0x4c1   :  { %1851 = vmatprep.subr.bf16.mxu0 %v2191_v1 }
 0x4c4   :  { %1852 = vmatpush3.bf16.msra.mxu0 %v1944_v5 }
 0x567   :  { %v1025_v12 = vpop.f32.mrf.mxu0 }
 0x568   :  { %v1026_v17 = vadd.f32 %v1560_v4, %v1025_v12 }
 0x569   :  { %v1807_v13 = vpop.f32.mrf.mxu0 }
 0x56a   :  { %v1083_v20 = vmul.f32 %v1026_v17, %v1026_v17  ;;  %v1055_v24 = vrot.slane %v1026_v17, 4 }
 0x56b   :  { %v1028_v14 = vpop.f32.mrf.mxu0 }
 0x56c   :  { %v1029_v16 = vadd.f32 %v1560_v4, %v1028_v14  ;;  %v1095_v29 = vrot.slane %v1083_v20, 4 }
 0x56d   :  { %v1808_v15 = vpop.f32.mrf.mxu0 }
 0x56e   :  { %v1084_v18 = vmul.f32 %v1029_v16, %v1029_v16  ;;  %v1056_v21 = vrot.slane %v1029_v16, 4 }
 0x570   :  { %v1096_v25 = vrot.slane %v1084_v18, 4  ;;  %v1057_v30 = vsel %vm1054_vm5, %v1055_v24, %v1056_v21 }
 0x572   :  { %v1097_v35 = vsel %vm1054_vm5, %v1095_v29, %v1096_v25 }
 0x577   :  { %v1033_v19 = vpop.f32.mrf.mxu0 }
 0x578   :  { %v1034_v22 = vadd.f32 %v1560_v4, %v1033_v19 }
 0x579   :  { %v1811_v23 = vpop.f32.mrf.mxu0 }
 0x57a   :  { %v1058_v26 = vrot.slane %v1034_v22, 4  ;;  %v1085_v27 = vmul.f32 %v1034_v22, %v1034_v22 }
 0x57b   :  { %v1036_v28 = vpop.f32.mrf.mxu0 }
 0x57c   :  { %v1059_v31 = vsel %vm1054_vm5, %v1056_v21, %v1058_v26  ;;  %v1098_v32 = vrot.slane %v1085_v27, 4  ;;  %v1037_v40 = vadd.f32 %v1560_v4, %v1036_v28 }
 0x57d   :  { %v1069_v33 = vadd.f32 %v1059_v31, %v1057_v30  ;;  %v1812_v34 = vpop.f32.mrf.mxu0 }
 0x57e   :  { %v1099_v36 = vsel %vm1054_vm5, %v1096_v25, %v1098_v32  ;;  %v1086_v49 = vmul.f32 %v1037_v40, %v1037_v40  ;;  %v1060_v52 = vrot.slane %v1037_v40, 4 }
 0x57f   :  { %v1070_v37 = vrot.slane %v1069_v33, 4  ;;  %v1109_v38 = vadd.f32 %v1099_v36, %v1097_v35  ;;  %v1041_v39 = vpop.f32.mrf.mxu0 }
 0x580   :  { %v1042_v41 = vadd.f32 %v1560_v4, %v1041_v39  ;;  %v1100_v60 = vrot.slane %v1086_v49, 4 }
 0x581   :  { %v1071_v42 = vadd.f32 %v1070_v37, %v1069_v33  ;;  %v1110_v43 = vrot.slane %v1109_v38, 4  ;;  %v1815_v44 = vpop.f32.mrf.mxu0 }
 0x582   :  { %v1087_v45 = vmul.f32 %v1042_v41, %v1042_v41  ;;  %v1061_v50 = vrot.slane %v1042_v41, 4 }
 0x583   :  { %v1072_v46 = vrot.slane %v1071_v42, 2  ;;  %v1111_v47 = vadd.f32 %v1110_v43, %v1109_v38  ;;  %v1044_v48 = vpop.f32.mrf.mxu0 }
 0x584   :  { %v1045_v51 = vadd.f32 %v1560_v4, %v1044_v48  ;;  %v1101_v53 = vrot.slane %v1087_v45, 4  ;;  %v1062_v61 = vsel %vm1054_vm5, %v1060_v52, %v1061_v50  ;;  %v1954_v52 = vld [vmem:[#allocation16 + $0x28] sm:$0xff]  }
 0x585   :  { %v1073_v54 = vadd.f32 %v1072_v46, %v1071_v42  ;;  %v1112_v55 = vrot.slane %v1111_v47, 2  ;;  %v1816_v56 = vpop.f32.mrf.mxu0 }
 0x586   :  { %v1063_v57 = vrot.slane %v1045_v51, 4  ;;  %v1088_v2 = vmul.f32 %v1045_v51, %v1045_v51  ;;  %v1102_v6 = vsel %vm1054_vm5, %v1100_v60, %v1101_v53  ;;  %v1953_v56 = vld [vmem:[#allocation16 + $0x30] sm:$0xff]  }
 0x587   :  { %v1074_v58 = vrot.slane %v1073_v54, 1  ;;  %v1113_v59 = vadd.f32 %v1112_v55, %v1111_v47  ;;  %v1952_v55 = vld [vmem:[#allocation16 + $0x38] sm:$0xff]  }
 0x588   :  { %v1064_v62 = vsel %vm1054_vm5, %v1061_v50, %v1063_v57  ;;  %v1103_v63 = vrot.slane %v1088_v2, 4  ;;  %v1956_v57 = vld [vmem:[#allocation16 + $0x18] sm:$0xff]   ;;  %v1957_v2 = vld [vmem:[#allocation16 + $0x10] sm:$0xff]  }
 0x589   :  { %v1075_v0 = vadd.f32 %v1074_v58, %v1073_v54  ;;  %v1114_v5 = vrot.slane %v1113_v59, 1  ;;  %v1076_v3 = vadd.f32 %v1064_v62, %v1062_v61  ;;  %v1958_v58 = vld [vmem:[#allocation16 + $0x8] sm:$0xff]  }
 0x58a   :  { %v1104_v7 = vsel %vm1054_vm5, %v1101_v53, %v1103_v63  ;;  %v1955_v53 = vld [vmem:[#allocation16 + $0x20] sm:$0xff]  }
 0x58b   :  { %v1123_v8 = vmul.f32 0.0625, %v1075_v0  ;;  %v1077_v9 = vrot.slane %v1076_v3, 4  ;;  %v1116_v10 = vadd.f32 %v1104_v7, %v1102_v6  ;;  %v1115_v11 = vadd.f32 %v1114_v5, %v1113_v59  ;;  %v1959_v59 = vld [vmem:[#allocation16] sm:$0xff]   ;;  %v1585_v5 = vld [vmem:[%s2696_s13] ss:$0 sm:$0xff]  ;;  %s2196_s13 = smov [#allocation17]  }
 0x58c   :  { %s1511_s28 = sshll.u32 %s2196_s13, 4  ;;  %s1512_s28 = int_to_ptr.vmem [resolvable:$true] %s1511_s28 }
 0x58d   :  { %v1125_v12 = vmul.f32 %v1123_v8, %v1075_v0  ;;  %v1078_v13 = vadd.f32 %v1077_v9, %v1076_v3  ;;  %v1117_v14 = vrot.slane %v1116_v10, 4  ;;  %v1148_v26 = vpack.c.bf16 %v1123_v8, %v1123_v8  ;;  %s2146_s29 = scalar_lea.vmem %s1512_s28, 32  ;;  %p2151_p4 = scmp.lt.s32.totalorder %s1512_s28, %s1512_s28 }
 0x58e   :  { %p2147_p3 = scmp.ne.s32.totalorder %s1512_s28, %s2146_s29  ;;  %p2152_p5 = scmp.lt.s32.totalorder %s2146_s29, %s2146_s29 }
 0x58f   :  { %v1127_v15 = vsub.f32 %v1115_v11, %v1125_v12  ;;  %v1079_v4 = vrot.slane %v1078_v13, 2  ;;  %v1118_v16 = vadd.f32 %v1117_v14, %v1116_v10  ;;  %v1282_v31 = vunpack.c.l.b16 %v1148_v26 }
 0x590   :  { %p2153_p6 = por %p2152_p5, %p2151_p4 }
 0x591   :  { %v1130_v17 = vmul.f32 0.06666667, %v1127_v15  ;;  %v1080_v18 = vadd.f32 %v1079_v4, %v1078_v13  ;;  %v1119_v19 = vrot.slane %v1118_v16, 2 }
 0x592   :  { %p2154_p7 = pnand %p2153_p6, %p2147_p3 }
 0x593   :  { %v1132_v20 = vmax.f32 %v1130_v17, 0.0  ;;  %v1081_v21 = vrot.slane %v1080_v18, 1  ;;  %v1120_v22 = vadd.f32 %v1119_v19, %v1118_v16 }
 0x595   :  { %v1082_v23 = vadd.f32 %v1081_v21, %v1080_v18  ;;  %v1121_v24 = vrot.slane %v1120_v22, 1  ;;  %1960 = vrsqrt.f32 %v1132_v20  ;;  %vm1136_vm7 = vcmp.eq.f32.partialorder %v1132_v20, inf }
 0x596   :  { %v1139_v40 = vand.u32 2147483648, %v1132_v20  ;;  %vm1138_vm8 = vcmp.eq.f32.partialorder %v1132_v20, 0.0 }
 0x597   :  { %v1124_v25 = vmul.f32 0.0625, %v1082_v23  ;;  %v1122_v27 = vadd.f32 %v1121_v24, %v1120_v22 }
 0x599   :  { %v1126_v28 = vmul.f32 %v1124_v25, %v1082_v23  ;;  %v1149_v29 = vpack.c.bf16 %v1124_v25, %v1124_v25 }
 0x59b   :  { %v1128_v30 = vsub.f32 %v1122_v27, %v1126_v28  ;;  %v1283_v32 = vunpack.c.l.b16 %v1149_v29 }
 0x59d   :  { %v1131_v33 = vmul.f32 0.06666667, %v1128_v30  ;;  %v1284_v34 = vsel %vm1188_vm6, %v1283_v32, %v1282_v31 }
 0x59e   :  { %v1285_v35 = vpack.c.b16 %v1284_v34, %v1284_v34 }
 0x59f   :  { %v1133_v36 = vmax.f32 %v1131_v33, 0.0 }
 0x5a0   :  { %1854 = vmatmul.mubr.bf16.vlgmr.msra.gmra.mxu0 %v1285_v35 }
 0x5a1   :  { %1962 = vrsqrt.f32 %v1133_v36  ;;  %vm1143_vm9 = vcmp.eq.f32.partialorder %v1133_v36, inf  ;;  %v1146_v44 = vand.u32 2147483648, %v1133_v36  ;;  %vm1145_vm10 = vcmp.eq.f32.partialorder %v1133_v36, 0.0 }
 0x5a2   :  { %v1961_v37 = vpop.eup %1960 }
 0x5a3   :  { %v1135_v38 = vmul.f32 %v1961_v37, %v1132_v20 }
 0x5a5   :  { %v1137_v39 = vsel %vm1136_vm7, %v1132_v20, %v1135_v38 }
 0x5a6   :  { %v1140_v42 = vsel %vm1138_vm8, %v1139_v40, %v1137_v39 }
 0x5a7   :  { %v1166_v46 = vpack.c.bf16 %v1140_v42, %v1140_v42 }
 0x5a9   :  { %v1186_v49 = vunpack.c.l.b16 %v1166_v46 }
 0x5ae   :  { %v1963_v41 = vpop.eup %1962 }
 0x5af   :  { %v1142_v43 = vmul.f32 %v1963_v41, %v1133_v36 }
 0x5b1   :  { %v1144_v45 = vsel %vm1143_vm9, %v1133_v36, %v1142_v43 }
 0x5b2   :  { %v1147_v47 = vsel %vm1145_vm10, %v1146_v44, %v1144_v45 }
 0x5b3   :  { %v1167_v48 = vpack.c.bf16 %v1147_v47, %v1147_v47 }
 0x5b5   :  { %v1187_v50 = vunpack.c.l.b16 %v1167_v48 }
 0x5b7   :  { %v1189_v51 = vsel %vm1188_vm6, %v1187_v50, %v1186_v49 }
 0x5b8   :  { %v1190_v54 = vpack.c.b16 %v1189_v51, %v1189_v51 }
 0x5ba   :  { %1834 = vmatmul.mubr.bf16.vlgmr.msra.gmra.mxu1 %v1190_v54 }
 0x5bb   :  { %1873 = vmatprep.mubr.msk.bf16.mxu1 %vm2195_vm4, %v2191_v1  ;;  %1858 = vmatpush3.bf16.msra.mxu1 %v1952_v55 }
 0x5bc   :  { %1859 = vmatprep.subr.bf16.mxu1 %v2191_v1 }
 0x5bf   :  { %1860 = vmatpush3.bf16.msra.mxu1 %v1953_v56 }
 0x5c0   :  { %1861 = vmatprep.subr.bf16.mxu1 %v2191_v1 }
 0x5c3   :  { %1862 = vmatpush3.bf16.msra.mxu1 %v1954_v52 }
 0x5c4   :  { %1863 = vmatprep.subr.bf16.mxu1 %v2191_v1 }
 0x5c7   :  { %1864 = vmatpush3.bf16.msra.mxu1 %v1955_v53 }
 0x5c8   :  { %1865 = vmatprep.subr.bf16.mxu1 %v2191_v1 }
 0x5cb   :  { %1866 = vmatpush3.bf16.msra.mxu1 %v1956_v57 }
 0x5cc   :  { %1867 = vmatprep.subr.bf16.mxu1 %v2191_v1 }
 0x5cf   :  { %1868 = vmatpush3.bf16.msra.mxu1 %v1957_v2 }
 0x5d0   :  { %1869 = vmatprep.subr.bf16.mxu1 %v2191_v1 }
 0x5d3   :  { %1870 = vmatpush3.bf16.msra.mxu1 %v1958_v58 }
 0x5d4   :  { %1871 = vmatprep.subr.bf16.mxu1 %v2191_v1  ;;  %v1586_v1 = vld [vmem:[%s2698_s15] ss:$0 sm:$0xff] }
 0x5d7   :  { %1872 = vmatpush3.bf16.msra.mxu1 %v1959_v59 }
 0x660   :  { %v1369_v60 = vpop.f32.mrf.mxu0 }
 0x662   :  { %v1855_v61 = vpop.f32.mrf.mxu0 }
 0x664   :  { %v1372_v62 = vpop.f32.mrf.mxu0 }
 0x666   :  { %v1856_v63 = vpop.f32.mrf.mxu0 }
 0x67a   :  { %v1274_v0 = vpop.f32.mrf.mxu1 }
 0x67b   :  { %v1370_v3 = vadd.f32 %v1369_v60, %v1274_v0 }
 0x67c   :  { %v1835_v6 = vpop.f32.mrf.mxu1 }
 0x67d   :  { %v1382_v7 = vadd.f32 %v1585_v5, %v1370_v3 }
 0x67e   :  { %v1277_v8 = vpop.f32.mrf.mxu1 }
 0x67f   :  { %v1383_v9 = vmax.f32 %v1382_v7, 0.0 }
 0x680   :  { %v1836_v10 = vpop.f32.mrf.mxu1 }
 0x681   :  { %v1384_v11 = vpack.c.bf16 %v1383_v9, %v1383_v9 }
 0x683   :  { %1874 = vmatmul.mubr.bf16.vlgmr.msra.gmra.mxu1 %v1384_v11 }
 0x743   :  { %v1490_v12 = vpop.f32.mrf.mxu1 }
 0x744   :  { %v1491_v13 = vadd.f32 %v1586_v1, %v1490_v12 }
 0x745   :  { %v1875_v14 = vpop.f32.mrf.mxu1 }
 0x746   :  { %v1496_v15 = vmul.f32 %v1491_v13, %v1491_v13 }
 0x747   :  { %v1493_v4 = vpop.f32.mrf.mxu1 }
 0x748   :  { %v1498_v16 = vsel %vm1497_vm11, %v1496_v15, 0.0 }
 0x749   :  { %1499 = vadd.xlane.f32.xlu0 %v1498_v16  ;;  %v1876_v17 = vpop.f32.mrf.mxu1 }
 0x7d2   :  { %v1500_v18 = vpop.xlane.xlu0 %1499 }
 0x7d3   :  { %v1501_v19 = vmax.f32 %v1500_v18, 1e-24 }
 0x7d5   :  { %1964 = vrsqrt.f32 %v1501_v19 }
 0x7e2   :  { %v1965_v20 = vpop.eup %1964 }
 0x7e3   :  { %v1503_v21 = vmul.f32 %v1965_v20, %v1491_v13 }
 0x7e5   :  { %1504 = vst [vmem:[#allocation17] sm:$0x3] %v1503_v21 }
 0x7e6   :  { %2157 = shalt.err (!%p2154_p7)
}
 0x7e7   :  { %1514 = dma.vmem_to_hbm [thread:$0]  %s1512_s28, 32, %s2699_s16, [#allocation4]  }
 0x7e8   :  { %2176 = dma.done.wait [#allocation4], 32  }
 0x7e9   :  { %2177 = vsyncadd [#allocation4], 4294967264 }
 0x7ea   :  { %1518 = vsyncpa [#allocation3], 1 }
 0x7eb   :  { %1519 = vsyncpa [#allocation6], 1 }
 0x7ec   :  { %1520 = vsyncpa [#allocation9], 1 }
 0x7ed   :  { %1521 = vsyncpa [#allocation12], 1 }
 0x7ee   :  { %1522 = vsyncpa [#allocation15], 1 }
 0x7ef   :  { %1523 = vsyncpa [#allocation4], 1 }

</bundles_post_ra>
